<compile_context>
chip_gen: v7x
topology: tpu7x:2x2x1
jax: 0.10.0
libtpu: 0.0.40
codegen_flags: <defaults>
</compile_context>

<pallas_src>
import jax
import jax.numpy as jnp
from jax.experimental import pallas as pl
from jax.experimental.pallas import tpu as pltpu

LN_EPS = 1e-5


# ---------------------------------------------------------------------------
# Fused kernel: [(LayerNorm -> Linear -> act) (+res)] * L -> Linear,
# operating on a lane-packed (TM, P*dim) activation slab.
# ---------------------------------------------------------------------------
def make_ff_kernel(num_layers, residual, activation, layer_norm):
    act_fn = {"relu": lambda v: jnp.maximum(v, 0.0), "tanh": jnp.tanh}[activation]

    def kernel(x_ref, *refs):
        o_ref = refs[-1]
        p = refs[:-1]

        h = x_ref[...].astype(jnp.float32)                  # (TM, P*d_in)

        i = 0
        for _ in range(num_layers):
            if layer_norm:
                mask = p[i][...]                            # (P*d, P*d) block-avg (1/d)
                w = p[i + 1][...]                           # (P*d, P*dh) block-diag(gamma*W)
                b = p[i + 2][...]                           # (1, P*dh)   tiled beta@W + b
                i += 3
                # Per-row-group mean/var via block-diagonal averaging matmuls
                # (MXU has huge slack at these widths; keeps VPU work minimal).
                mu = jnp.dot(h, mask, preferred_element_type=jnp.float32)
                d = h - mu
                var = jnp.dot(d * d, mask, preferred_element_type=jnp.float32)
                hn = d * jax.lax.rsqrt(var + LN_EPS)
            else:
                w = p[i][...]
                b = p[i + 1][...]
                i += 2
                hn = h

            z = jnp.dot(hn, w, preferred_element_type=jnp.float32) + b
            z = act_fn(z)
            h = h + z if residual else z
            # TODO(synk): dropout_rate > 0 (training-mode RNG masking) not
            # implemented; matches eval-mode / dropout_rate=0 semantics.

        w_out = p[i][...]                                   # (P*d_last, P*d_out)
        b_out = p[i + 1][...]                               # (1, P*d_out)
        y = jnp.dot(h, w_out, preferred_element_type=jnp.float32) + b_out
        o_ref[...] = y.astype(o_ref.dtype)

    return kernel


# ---------------------------------------------------------------------------
# Wrapper helpers
# ---------------------------------------------------------------------------
def _round_up(a, b):
    return ((a + b - 1) // b) * b


def _const_index_map(ndim):
    # Properly-bound constant index map (no late-binding over loop variables).
    return lambda *_: (0,) * ndim


def _pack_factor(dims):
    """Smallest power-of-two P making every packed width a multiple of 128
    (full-lane vregs, unmasked stores) without letting the block-diagonal
    weights explode for awkward dims."""
    p = 1
    while p < 64:
        if all((p * d) % 128 == 0 for d in dims):
            break
        if p * max(dims) >= 512:
            break
        p *= 2
    return p


def _block_diag(w, p):
    """(d_in, d_out) -> (p*d_in, p*d_out): p copies of w on the diagonal."""
    return jnp.kron(jnp.eye(p, dtype=w.dtype), w)


def _default_row_target():
    """Per-generation row-tile target (original rows)."""
    try:
        kind = jax.devices()[0].device_kind.lower()
    except Exception:
        return 8192
    if "v5 lite" in kind or "v5e" in kind or "v5lite" in kind:
        return 4096
    if "v7" in kind:
        return 16384
    return 8192


# ---------------------------------------------------------------------------
# Wrapper (single pallas_call, lane-packed, row-tiled)
# ---------------------------------------------------------------------------
def ff_forward(x, params, *, residual_connection, activation="relu",
               layer_norm=True, tm_rows=None):
    """Full FF.forward.  x: (..., dim_input) -> (..., dim_output)."""
    lead = x.shape[:-1]
    d_in = x.shape[-1]
    num_layers = len(params["stack"])
    w_out, b_out = params["out"]
    d_out = w_out.shape[1]
    d_hidden = params["stack"][0][2].shape[1] if num_layers > 0 else d_in

    if residual_connection and num_layers > 0:
        assert d_hidden == d_in, (
            "residual_connection requires dim_hidden == dim_input")

    # ---- lane-packing factor & packed (gamma/beta-folded) parameters -------
    pf = _pack_factor([d_in, d_out] + ([d_hidden] if num_layers > 0 else []))

    flat_params = []
    for (gamma, beta, w, b) in params["stack"]:
        d = w.shape[0]
        wf32 = w.astype(jnp.float32)
        bf32 = b.reshape(1, -1).astype(jnp.float32)
        if layer_norm:
            # Fold LN affine into the Linear:
            #   (hn*gamma + beta) @ W + b == hn @ (diag(gamma)@W) + (beta@W + b)
            w_f = gamma.reshape(d, 1).astype(jnp.float32) * wf32
            b_f = beta.reshape(1, d).astype(jnp.float32) @ wf32 + bf32
            mask = jnp.kron(jnp.eye(pf, dtype=jnp.float32),
                            jnp.full((d, d), 1.0 / d, jnp.float32))
            flat_params += [mask, _block_diag(w_f, pf), jnp.tile(b_f, (1, pf))]
        else:
            flat_params += [_block_diag(wf32, pf), jnp.tile(bf32, (1, pf))]
    flat_params += [_block_diag(w_out.astype(jnp.float32), pf),
                    jnp.tile(b_out.reshape(1, -1).astype(jnp.float32), (1, pf))]

    # ---- pack rows: (n, d_in) -> (n/pf, pf*d_in) ----------------------------
    x2 = x.reshape(-1, d_in)
    n = x2.shape[0]
    n1 = _round_up(n, pf)
    if n1 != n:
        x2 = jnp.pad(x2, ((0, n1 - n), (0, 0)))
    np_rows = n1 // pf
    xp = x2.reshape(np_rows, pf * d_in)

    # ---- tile selection: generation-scaled, padding-balanced, >=2 steps -----
    if tm_rows is None:
        tm_rows = _default_row_target()
    target_packed = max(8, _round_up(max(1, tm_rows // pf), 8))
    steps = max(1, pl.cdiv(np_rows, target_packed))
    if steps < 2 and np_rows >= 16:
        steps = 2                      # let v7x shard the row axis over 2 TCs
    tile = max(8, _round_up(pl.cdiv(np_rows, steps), 8))
    steps = pl.cdiv(np_rows, tile)
    np_pad = steps * tile
    if np_pad != np_rows:
        xp = jnp.pad(xp, ((0, np_pad - np_rows), (0, 0)))

    # ---- pallas_call ---------------------------------------------------------
    kernel = make_ff_kernel(num_layers, residual_connection, activation, layer_norm)

    x_spec = pl.BlockSpec((tile, pf * d_in), lambda i: (i, 0))
    out_spec = pl.BlockSpec((tile, pf * d_out), lambda i: (i, 0))
    param_specs = [pl.BlockSpec(q.shape, _const_index_map(q.ndim))
                   for q in flat_params]

    # Explicit VMEM budget: double-buffered I/O + resident params + headroom
    # for the handful of (tile, pf*d) f32 intermediates.
    act_w = pf * max(d_in, d_hidden, d_out)
    vmem_est = (2 * tile * pf * (d_in + d_out) * 4
                + 2 * sum(int(q.size) * 4 for q in flat_params)
                + 8 * tile * act_w * 4)
    vmem_limit = int(min(56 << 20, max(24 << 20, vmem_est)))

    yp = pl.pallas_call(
        kernel,
        out_shape=jax.ShapeDtypeStruct((np_pad, pf * d_out), x.dtype),
        grid_spec=pltpu.PrefetchScalarGridSpec(
            num_scalar_prefetch=0,
            grid=(steps,),
            in_specs=[x_spec] + param_specs,
            out_specs=out_spec,
        ),
        compiler_params=pltpu.CompilerParams(
            dimension_semantics=("parallel",),
            vmem_limit_bytes=vmem_limit),
    )(xp, *flat_params)

    y = yp[:np_rows].reshape(n1, d_out)[:n]
    return y.reshape(*lead, d_out)


# ---------------------------------------------------------------------------
# Deterministic parameter init (mirrors nn.Linear / nn.LayerNorm defaults)
# ---------------------------------------------------------------------------
def init_ff_params(key, dim_input, dim_hidden, dim_output, num_layers):
    params = {"stack": [], "out": None}
    for l in range(num_layers):
        d_in = dim_input if l == 0 else dim_hidden
        key, kw, kb = jax.random.split(key, 3)
        bound = 1.0 / jnp.sqrt(d_in)
        gamma = jnp.ones((1, d_in), jnp.float32)           # LayerNorm weight
        beta = jnp.zeros((1, d_in), jnp.float32)           # LayerNorm bias
        w = jax.random.uniform(kw, (d_in, dim_hidden), jnp.float32, -bound, bound)
        b = jax.random.uniform(kb, (1, dim_hidden), jnp.float32, -bound, bound)
        params["stack"].append((gamma, beta, w, b))
    d_last = dim_input if num_layers < 1 else dim_hidden
    key, kw, kb = jax.random.split(key, 3)
    bound = 1.0 / jnp.sqrt(d_last)
    w_out = jax.random.uniform(kw, (d_last, dim_output), jnp.float32, -bound, bound)
    b_out = jax.random.uniform(kb, (1, dim_output), jnp.float32, -bound, bound)
    params["out"] = (w_out, b_out)
    return params


# ---------------------------------------------------------------------------
# Pure-JAX reference for a correctness check
# ---------------------------------------------------------------------------
def ff_reference(x, params, *, residual_connection):
    h = x
    for (gamma, beta, w, b) in params["stack"]:
        mu = jnp.mean(h, axis=-1, keepdims=True)
        var = jnp.mean((h - mu) ** 2, axis=-1, keepdims=True)
        hn = (h - mu) / jnp.sqrt(var + LN_EPS) * gamma[0] + beta[0]
        out = jnp.maximum(hn @ w + b[0], 0.0)
        h = h + out if residual_connection else out
    w_out, b_out = params["out"]
    return h @ w_out + b_out[0]


if __name__ == "__main__":
    # FF(dim_input=32, dim_hidden=32, dim_output=16, num_layers=2,
    #    activation='relu', dropout_rate=0, layer_norm=True,
    #    residual_connection=True)
    dim_input, dim_hidden, dim_output, num_layers = 32, 32, 16, 2
    residual_connection = True

    key = jax.random.PRNGKey(0)
    key, kx = jax.random.split(key)
    x = jax.random.normal(kx, (2, 8, dim_input), jnp.float32)   # (batch, seq, dim)

    params = init_ff_params(key, dim_input, dim_hidden, dim_output, num_layers)

    # Small single-tile check.
    y_ref = ff_reference(x, params, residual_connection=residual_connection)
    y = ff_forward(x, params, residual_connection=residual_connection)
    y = jax.block_until_ready(y)
    assert y.shape == (2, 8, dim_output)
    assert jnp.allclose(y, y_ref, atol=1e-4, rtol=1e-4), "mismatch vs reference (small)"

    # Ragged / multi-tile path: N=200 rows with a forced small row target to
    # exercise the packed multi-step grid + padding logic.
    key, kx2 = jax.random.split(key)
    x2 = jax.random.normal(kx2, (4, 50, dim_input), jnp.float32)
    y2_ref = ff_reference(x2, params, residual_connection=residual_connection)
    y2 = ff_forward(x2, params, residual_connection=residual_connection, tm_rows=64)
    y2 = jax.block_until_ready(y2)
    assert y2.shape == (4, 50, dim_output)
    assert jnp.allclose(y2, y2_ref, atol=1e-4, rtol=1e-4), "mismatch vs reference (multi-tile)"

    print("KERNEL_OK")
</pallas_src>

<mosaic_0001>
module attributes {stable_mosaic.version = 11 : i64} {
  func.func @kernel(%arg0: i32, %arg1: memref<8x256xf32, #tpu.memory_space<vmem>>, %arg2: memref<256x256xf32, #tpu.memory_space<vmem>>, %arg3: memref<256x256xf32, #tpu.memory_space<vmem>>, %arg4: memref<1x256xf32, #tpu.memory_space<vmem>>, %arg5: memref<256x256xf32, #tpu.memory_space<vmem>>, %arg6: memref<256x256xf32, #tpu.memory_space<vmem>>, %arg7: memref<1x256xf32, #tpu.memory_space<vmem>>, %arg8: memref<256x128xf32, #tpu.memory_space<vmem>>, %arg9: memref<1x128xf32, #tpu.memory_space<vmem>>, %arg10: memref<8x128xf32, #tpu.memory_space<vmem>>) attributes {dimension_semantics = [#tpu.dimension_semantics<parallel>], iteration_bounds = array<i64: 1>, scalar_prefetch = 0 : i64, scratch_operands = 0 : i64, tpu.core_type = #tpu.core_type<tc>, window_params = [{transform_indices = @transform_0, window_bounds = array<i64: 8, 256>}, {pipeline_mode = #tpu.pipeline_mode<synchronous>, transform_indices = @transform_1, window_bounds = array<i64: 256, 256>}, {pipeline_mode = #tpu.pipeline_mode<synchronous>, transform_indices = @transform_2, window_bounds = array<i64: 256, 256>}, {pipeline_mode = #tpu.pipeline_mode<synchronous>, transform_indices = @transform_3, window_bounds = array<i64: 1, 256>}, {pipeline_mode = #tpu.pipeline_mode<synchronous>, transform_indices = @transform_4, window_bounds = array<i64: 256, 256>}, {pipeline_mode = #tpu.pipeline_mode<synchronous>, transform_indices = @transform_5, window_bounds = array<i64: 256, 256>}, {pipeline_mode = #tpu.pipeline_mode<synchronous>, transform_indices = @transform_6, window_bounds = array<i64: 1, 256>}, {pipeline_mode = #tpu.pipeline_mode<synchronous>, transform_indices = @transform_7, window_bounds = array<i64: 256, 128>}, {pipeline_mode = #tpu.pipeline_mode<synchronous>, transform_indices = @transform_8, window_bounds = array<i64: 1, 128>}, {transform_indices = @transform_9, window_bounds = array<i64: 8, 128>}]} {
    %c0 = arith.constant 0 : index
    %c0_0 = arith.constant 0 : index
    %0 = vector.load %arg1[%c0, %c0_0] : memref<8x256xf32, #tpu.memory_space<vmem>>, vector<8x256xf32>
    %c0_1 = arith.constant 0 : index
    %c0_2 = arith.constant 0 : index
    %1 = vector.load %arg2[%c0_1, %c0_2] : memref<256x256xf32, #tpu.memory_space<vmem>>, vector<256x256xf32>
    %c0_3 = arith.constant 0 : index
    %c0_4 = arith.constant 0 : index
    %2 = vector.load %arg3[%c0_3, %c0_4] : memref<256x256xf32, #tpu.memory_space<vmem>>, vector<256x256xf32>
    %c0_5 = arith.constant 0 : index
    %c0_6 = arith.constant 0 : index
    %3 = vector.load %arg4[%c0_5, %c0_6] : memref<1x256xf32, #tpu.memory_space<vmem>>, vector<1x256xf32>
    %cst = arith.constant dense<0.000000e+00> : vector<8x256xf32>
    %4 = tpu.matmul %0, %1, %cst {dimension_numbers = #tpu.dot_dimension_numbers<[1], [0], [0], [1], [0, 0, 1, 1], [], []>} : vector<8x256xf32>, vector<256x256xf32>, vector<8x256xf32> -> vector<8x256xf32>
    %5 = arith.subf %0, %4 : vector<8x256xf32>
    %6 = arith.mulf %5, %5 : vector<8x256xf32>
    %cst_7 = arith.constant dense<0.000000e+00> : vector<8x256xf32>
    %7 = tpu.matmul %6, %1, %cst_7 {dimension_numbers = #tpu.dot_dimension_numbers<[1], [0], [0], [1], [0, 0, 1, 1], [], []>} : vector<8x256xf32>, vector<256x256xf32>, vector<8x256xf32> -> vector<8x256xf32>
    %cst_8 = arith.constant 9.99999974E-6 : f32
    %8 = vector.broadcast %cst_8 : f32 to vector<8x256xf32>
    %9 = arith.addf %7, %8 : vector<8x256xf32>
    %10 = math.rsqrt %9 : vector<8x256xf32>
    %11 = arith.mulf %5, %10 : vector<8x256xf32>
    %cst_9 = arith.constant dense<0.000000e+00> : vector<8x256xf32>
    %12 = tpu.matmul %11, %2, %cst_9 {dimension_numbers = #tpu.dot_dimension_numbers<[1], [0], [0], [1], [0, 0, 1, 1], [], []>} : vector<8x256xf32>, vector<256x256xf32>, vector<8x256xf32> -> vector<8x256xf32>
    %13 = vector.broadcast %3 : vector<1x256xf32> to vector<8x256xf32>
    %14 = arith.addf %12, %13 : vector<8x256xf32>
    %cst_10 = arith.constant 0.000000e+00 : f32
    %15 = vector.broadcast %cst_10 : f32 to vector<8x256xf32>
    %16 = arith.maximumf %14, %15 : vector<8x256xf32>
    %17 = arith.addf %0, %16 : vector<8x256xf32>
    %c0_11 = arith.constant 0 : index
    %c0_12 = arith.constant 0 : index
    %18 = vector.load %arg5[%c0_11, %c0_12] : memref<256x256xf32, #tpu.memory_space<vmem>>, vector<256x256xf32>
    %c0_13 = arith.constant 0 : index
    %c0_14 = arith.constant 0 : index
    %19 = vector.load %arg6[%c0_13, %c0_14] : memref<256x256xf32, #tpu.memory_space<vmem>>, vector<256x256xf32>
    %c0_15 = arith.constant 0 : index
    %c0_16 = arith.constant 0 : index
    %20 = vector.load %arg7[%c0_15, %c0_16] : memref<1x256xf32, #tpu.memory_space<vmem>>, vector<1x256xf32>
    %cst_17 = arith.constant dense<0.000000e+00> : vector<8x256xf32>
    %21 = tpu.matmul %17, %18, %cst_17 {dimension_numbers = #tpu.dot_dimension_numbers<[1], [0], [0], [1], [0, 0, 1, 1], [], []>} : vector<8x256xf32>, vector<256x256xf32>, vector<8x256xf32> -> vector<8x256xf32>
    %22 = arith.subf %17, %21 : vector<8x256xf32>
    %23 = arith.mulf %22, %22 : vector<8x256xf32>
    %cst_18 = arith.constant dense<0.000000e+00> : vector<8x256xf32>
    %24 = tpu.matmul %23, %18, %cst_18 {dimension_numbers = #tpu.dot_dimension_numbers<[1], [0], [0], [1], [0, 0, 1, 1], [], []>} : vector<8x256xf32>, vector<256x256xf32>, vector<8x256xf32> -> vector<8x256xf32>
    %cst_19 = arith.constant 9.99999974E-6 : f32
    %25 = vector.broadcast %cst_19 : f32 to vector<8x256xf32>
    %26 = arith.addf %24, %25 : vector<8x256xf32>
    %27 = math.rsqrt %26 : vector<8x256xf32>
    %28 = arith.mulf %22, %27 : vector<8x256xf32>
    %cst_20 = arith.constant dense<0.000000e+00> : vector<8x256xf32>
    %29 = tpu.matmul %28, %19, %cst_20 {dimension_numbers = #tpu.dot_dimension_numbers<[1], [0], [0], [1], [0, 0, 1, 1], [], []>} : vector<8x256xf32>, vector<256x256xf32>, vector<8x256xf32> -> vector<8x256xf32>
    %30 = vector.broadcast %20 : vector<1x256xf32> to vector<8x256xf32>
    %31 = arith.addf %29, %30 : vector<8x256xf32>
    %cst_21 = arith.constant 0.000000e+00 : f32
    %32 = vector.broadcast %cst_21 : f32 to vector<8x256xf32>
    %33 = arith.maximumf %31, %32 : vector<8x256xf32>
    %34 = arith.addf %17, %33 : vector<8x256xf32>
    %c0_22 = arith.constant 0 : index
    %c0_23 = arith.constant 0 : index
    %35 = vector.load %arg8[%c0_22, %c0_23] : memref<256x128xf32, #tpu.memory_space<vmem>>, vector<256x128xf32>
    %c0_24 = arith.constant 0 : index
    %c0_25 = arith.constant 0 : index
    %36 = vector.load %arg9[%c0_24, %c0_25] : memref<1x128xf32, #tpu.memory_space<vmem>>, vector<1x128xf32>
    %cst_26 = arith.constant dense<0.000000e+00> : vector<8x128xf32>
    %37 = tpu.matmul %34, %35, %cst_26 {dimension_numbers = #tpu.dot_dimension_numbers<[1], [0], [0], [1], [0, 0, 1, 1], [], []>} : vector<8x256xf32>, vector<256x128xf32>, vector<8x128xf32> -> vector<8x128xf32>
    %38 = vector.broadcast %36 : vector<1x128xf32> to vector<8x128xf32>
    %39 = arith.addf %37, %38 : vector<8x128xf32>
    %c0_27 = arith.constant 0 : index
    %c0_28 = arith.constant 0 : index
    %40 = vector.load %arg10[%c0_27, %c0_28] : memref<8x128xf32, #tpu.memory_space<vmem>>, vector<8x128xf32>
    tpu.vector_store %arg10[%c0_27, %c0_28], %39 {strides = array<i32>} : memref<8x128xf32, #tpu.memory_space<vmem>>, vector<8x128xf32>,
    return
  }
  func.func @transform_0(%arg0: i32) -> (i32, i32) {
    %c0_i32 = arith.constant 0 : i32
    %c0_i32_0 = arith.constant 0 : i32
    return %arg0, %c0_i32 : i32, i32
  }
  func.func @transform_1(%arg0: i32) -> (i32, i32) {
    %c0_i32 = arith.constant 0 : i32
    %c0_i32_0 = arith.constant 0 : i32
    %c0_i32_1 = arith.constant 0 : i32
    return %c0_i32, %c0_i32_0 : i32, i32
  }
  func.func @transform_2(%arg0: i32) -> (i32, i32) {
    %c0_i32 = arith.constant 0 : i32
    %c0_i32_0 = arith.constant 0 : i32
    %c0_i32_1 = arith.constant 0 : i32
    return %c0_i32, %c0_i32_0 : i32, i32
  }
  func.func @transform_3(%arg0: i32) -> (i32, i32) {
    %c0_i32 = arith.constant 0 : i32
    %c0_i32_0 = arith.constant 0 : i32
    %c0_i32_1 = arith.constant 0 : i32
    return %c0_i32, %c0_i32_0 : i32, i32
  }
  func.func @transform_4(%arg0: i32) -> (i32, i32) {
    %c0_i32 = arith.constant 0 : i32
    %c0_i32_0 = arith.constant 0 : i32
    %c0_i32_1 = arith.constant 0 : i32
    return %c0_i32, %c0_i32_0 : i32, i32
  }
  func.func @transform_5(%arg0: i32) -> (i32, i32) {
    %c0_i32 = arith.constant 0 : i32
    %c0_i32_0 = arith.constant 0 : i32
    %c0_i32_1 = arith.constant 0 : i32
    return %c0_i32, %c0_i32_0 : i32, i32
  }
  func.func @transform_6(%arg0: i32) -> (i32, i32) {
    %c0_i32 = arith.constant 0 : i32
    %c0_i32_0 = arith.constant 0 : i32
    %c0_i32_1 = arith.constant 0 : i32
    return %c0_i32, %c0_i32_0 : i32, i32
  }
  func.func @transform_7(%arg0: i32) -> (i32, i32) {
    %c0_i32 = arith.constant 0 : i32
    %c0_i32_0 = arith.constant 0 : i32
    %c0_i32_1 = arith.constant 0 : i32
    return %c0_i32, %c0_i32_0 : i32, i32
  }
  func.func @transform_8(%arg0: i32) -> (i32, i32) {
    %c0_i32 = arith.constant 0 : i32
    %c0_i32_0 = arith.constant 0 : i32
    %c0_i32_1 = arith.constant 0 : i32
    return %c0_i32, %c0_i32_0 : i32, i32
  }
  func.func @transform_9(%arg0: i32) -> (i32, i32) {
    %c0_i32 = arith.constant 0 : i32
    %c0_i32_0 = arith.constant 0 : i32
    return %arg0, %c0_i32 : i32, i32
  }
}

</mosaic_0001>

<bundles_post_ra>
// kernel: tpu_custom_call.1
= control target key start
LH: loop header
LB: loop body
LE: loop exit
PB: predicated region body
PF: predicated region fallthrough
CT: control target
= control target key end

     0   :  { %14 = vsyncpa [#allocation3], 0  ;;  %s1898_s0 = inlined_call_operand.hbm [shape: f32[8,256], index: 0, kind: input, shape index: {}]   ;;  %s1899_s1 = inlined_call_operand.hbm [shape: f32[256,256], index: 1, kind: input, shape index: {}]   ;;  %s1900_s2 = inlined_call_operand.hbm [shape: f32[256,256], index: 2, kind: input, shape index: {}]   ;;  %s1901_s3 = inlined_call_operand.vmem [shape: f32[1,256], index: 3, kind: input, shape index: {}]   ;;  %s1902_s4 = inlined_call_operand.hbm [shape: f32[256,256], index: 4, kind: input, shape index: {}]   ;;  %s1903_s5 = inlined_call_operand.hbm [shape: f32[256,256], index: 5, kind: input, shape index: {}]   ;;  %s1904_s6 = inlined_call_operand.vmem [shape: f32[1,256], index: 6, kind: input, shape index: {}]   ;;  %s1905_s7 = inlined_call_operand.hbm [shape: f32[256,128], index: 7, kind: input, shape index: {}]   ;;  %s1906_s8 = inlined_call_operand.vmem [shape: f32[1,128], index: 8, kind: input, shape index: {}]   ;;  %s1907_s9 = inlined_call_operand.hbm [shape: f32[8,128], index: 9, kind: output, shape index: {}]  }
   0x1   :  { %15 = vsyncpa [#allocation6], 0 }
   0x2   :  { %16 = vsyncpa [#allocation9], 0 }
   0x3   :  { %17 = vsyncpa [#allocation12], 0 }
   0x4   :  { %18 = vsyncpa [#allocation4], 0  ;;  %s1608_s30 = smov [#allocation5]   ;;  %s1444_s13 = scalar_lea.hbm %s1899_s1, 8192 }
   0x5   :  { %s34_s10 = sshll.u32 %s1608_s30, 4  ;;  %p1445_p0 = scmp.ne.s32.totalorder %s1899_s1, %s1444_s13  ;;  %s35_s10 = int_to_ptr.vmem [resolvable:$true] %s34_s10 }
   0x6   :  { %p1448_p1 = scmp.lt.u32.totalorder %s1444_s13, %s1899_s1 }
   0x8   :  { %p1450_p2 = pnand %p1448_p1, %p1445_p0 }
   0xa   :  { %1453 = shalt.err (!%p1450_p2)
}
   0xb   :  { %s1454_s18 = scalar_lea.vmem %s35_s10, 8192  ;;  %p1459_p4 = scmp.lt.s32.totalorder %s35_s10, %s35_s10 }
   0xc   :  { %p1455_p3 = scmp.ne.s32.totalorder %s35_s10, %s1454_s18  ;;  %p1460_p5 = scmp.lt.s32.totalorder %s1454_s18, %s1454_s18 }
   0xe   :  { %p1461_p6 = por %p1460_p5, %p1459_p4 }
  0x10   :  { %p1462_p7 = pnand %p1461_p6, %p1455_p3 }
  0x12   :  { %1465 = shalt.err (!%p1462_p7)
}
  0x13   :  { %s1609_s19 = smov 256   ;;  %s1610_s20 = smov 16  }
  0x14   :  { %40 = dma.hbm_to_vmem [thread:$0]  %s1899_s1, 8192, %s35_s10, [#allocation6], %s1609_s19, %s1609_s19, %s1610_s20  }
  0x15   :  { %s1611_s23 = smov [#allocation8]   ;;  %s1612_s25 = smov [#allocation2]  }
  0x16   :  { %s60_s24 = sshll.u32 %s1611_s23, 4  ;;  %s25_s26 = sshll.u32 %s1612_s25, 4  ;;  %s61_s24 = int_to_ptr.vmem [resolvable:$true] %s60_s24  ;;  %s26_s26 = int_to_ptr.vmem [resolvable:$true] %s25_s26 }
  0x17   :  { %s1466_s29 = scalar_lea.hbm %s1902_s4, 8192 }
  0x18   :  { %p1467_p8 = scmp.ne.s32.totalorder %s1902_s4, %s1466_s29  ;;  %p1470_p9 = scmp.lt.u32.totalorder %s1466_s29, %s1902_s4 }
  0x1a   :  { %p1472_p10 = pnand %p1470_p9, %p1467_p8 }
  0x1c   :  { %1475 = shalt.err (!%p1472_p10)
}
  0x1d   :  { %s1476_s1 = scalar_lea.vmem %s61_s24, 8192  ;;  %p1481_p12 = scmp.lt.s32.totalorder %s61_s24, %s61_s24 }
  0x1e   :  { %p1477_p11 = scmp.ne.s32.totalorder %s61_s24, %s1476_s1  ;;  %p1482_p13 = scmp.lt.s32.totalorder %s1476_s1, %s1476_s1 }
  0x20   :  { %p1483_p0 = por %p1482_p13, %p1481_p12 }
  0x22   :  { %p1484_p1 = pnand %p1483_p0, %p1477_p11 }
  0x24   :  { %1487 = shalt.err (!%p1484_p1)
}
  0x25   :  { %66 = dma.hbm_to_vmem [thread:$0]  %s1902_s4, 8192, %s61_s24, [#allocation9], %s1609_s19, %s1609_s19, %s1610_s20  }
  0x26   :  { %s1488_s17 = scalar_lea.hbm %s1898_s0, 256 }
  0x27   :  { %p1489_p2 = scmp.ne.s32.totalorder %s1898_s0, %s1488_s17  ;;  %p1492_p3 = scmp.lt.u32.totalorder %s1488_s17, %s1898_s0 }
  0x29   :  { %p1494_p4 = pnand %p1492_p3, %p1489_p2 }
  0x2b   :  { %1497 = shalt.err (!%p1494_p4)
}
  0x2c   :  { %s1498_s25 = scalar_lea.vmem %s26_s26, 256  ;;  %p1503_p6 = scmp.lt.s32.totalorder %s26_s26, %s26_s26 }
  0x2d   :  { %p1499_p5 = scmp.ne.s32.totalorder %s26_s26, %s1498_s25  ;;  %p1504_p7 = scmp.lt.s32.totalorder %s1498_s25, %s1498_s25 }
  0x2f   :  { %p1505_p8 = por %p1504_p7, %p1503_p6 }
  0x31   :  { %p1506_p9 = pnand %p1505_p8, %p1499_p5 }
  0x33   :  { %1509 = shalt.err (!%p1506_p9)
}
  0x34   :  { %28 = dma.hbm_to_vmem [thread:$0]  %s1898_s0, 256, %s26_s26, [#allocation3]  }
  0x35   :  { %s1613_s27 = smov [#allocation7]   ;;  %s1614_s29 = smov [#allocation10]  }
  0x36   :  { %s46_s28 = sshll.u32 %s1613_s27, 4  ;;  %s72_s30 = sshll.u32 %s1614_s29, 4  ;;  %s47_s28 = int_to_ptr.vmem [resolvable:$true] %s46_s28  ;;  %s73_s30 = int_to_ptr.vmem [resolvable:$true] %s72_s30 }
  0x37   :  { %s1510_s13 = scalar_lea.hbm %s1900_s2, 8192 }
  0x38   :  { %p1511_p10 = scmp.ne.s32.totalorder %s1900_s2, %s1510_s13  ;;  %p1514_p11 = scmp.lt.u32.totalorder %s1510_s13, %s1900_s2 }
  0x3a   :  { %p1516_p12 = pnand %p1514_p11, %p1511_p10 }
  0x3c   :  { %1519 = shalt.err (!%p1516_p12)
}
  0x3d   :  { %s1520_s0 = scalar_lea.vmem %s47_s28, 8192  ;;  %p1525_p0 = scmp.lt.s32.totalorder %s47_s28, %s47_s28 }
  0x3e   :  { %p1521_p13 = scmp.ne.s32.totalorder %s47_s28, %s1520_s0  ;;  %p1526_p1 = scmp.lt.s32.totalorder %s1520_s0, %s1520_s0 }
  0x40   :  { %p1527_p2 = por %p1526_p1, %p1525_p0 }
  0x42   :  { %p1528_p3 = pnand %p1527_p2, %p1521_p13 }
  0x44   :  { %1531 = shalt.err (!%p1528_p3)
}
  0x45   :  { %52 = dma.hbm_to_vmem [thread:$0]  %s1900_s2, 8192, %s47_s28, [#allocation6], %s1609_s19, %s1609_s19, %s1610_s20  }
  0x46   :  { %s1532_s21 = scalar_lea.hbm %s1903_s5, 8192 }
  0x47   :  { %p1533_p4 = scmp.ne.s32.totalorder %s1903_s5, %s1532_s21  ;;  %p1536_p5 = scmp.lt.u32.totalorder %s1532_s21, %s1903_s5 }
  0x49   :  { %p1538_p6 = pnand %p1536_p5, %p1533_p4 }
  0x4b   :  { %1541 = shalt.err (!%p1538_p6)
}
  0x4c   :  { %s1542_s24 = scalar_lea.vmem %s73_s30, 8192  ;;  %p1547_p8 = scmp.lt.s32.totalorder %s73_s30, %s73_s30 }
  0x4d   :  { %p1543_p7 = scmp.ne.s32.totalorder %s73_s30, %s1542_s24  ;;  %p1548_p9 = scmp.lt.s32.totalorder %s1542_s24, %s1542_s24 }
  0x4f   :  { %p1549_p10 = por %p1548_p9, %p1547_p8 }
  0x51   :  { %p1550_p11 = pnand %p1549_p10, %p1543_p7 }
  0x53   :  { %1553 = shalt.err (!%p1550_p11)
}
  0x54   :  { %78 = dma.hbm_to_vmem [thread:$0]  %s1903_s5, 8192, %s73_s30, [#allocation9], %s1609_s19, %s1609_s19, %s1610_s20  }
  0x55   :  { %s1615_s28 = smov [#allocation11]   ;;  %s1554_s13 = scalar_lea.hbm %s1905_s7, 4096 }
  0x56   :  { %s86_s29 = sshll.u32 %s1615_s28, 4  ;;  %p1555_p12 = scmp.ne.s32.totalorder %s1905_s7, %s1554_s13  ;;  %s87_s29 = int_to_ptr.vmem [resolvable:$true] %s86_s29 }
  0x57   :  { %p1558_p13 = scmp.lt.u32.totalorder %s1554_s13, %s1905_s7 }
  0x59   :  { %p1560_p0 = pnand %p1558_p13, %p1555_p12 }
  0x5b   :  { %1563 = shalt.err (!%p1560_p0)
}
  0x5c   :  { %s1564_s0 = scalar_lea.vmem %s87_s29, 4096  ;;  %p1569_p2 = scmp.lt.s32.totalorder %s87_s29, %s87_s29 }
  0x5d   :  { %p1565_p1 = scmp.ne.s32.totalorder %s87_s29, %s1564_s0  ;;  %p1570_p3 = scmp.lt.s32.totalorder %s1564_s0, %s1564_s0 }
  0x5f   :  { %p1571_p4 = por %p1570_p3, %p1569_p2 }
  0x61   :  { %p1572_p5 = pnand %p1571_p4, %p1565_p1 }
  0x63   :  { %1575 = shalt.err (!%p1572_p5)
}
  0x64   :  { %s1616_s5 = smov 128   ;;  %s1617_s19 = smov 8  }
  0x65   :  { %92 = dma.hbm_to_vmem [thread:$0]  %s1905_s7, 4096, %s87_s29, [#allocation12], %s1616_s5, %s1616_s5, %s1617_s19  }
  0x66   :  { %1598 = dma.done.wait [#allocation3], 256  }
  0x67   :  { %1599 = vsyncadd [#allocation3], 4294967040 }
  0x68   :  { %1600 = dma.done.wait [#allocation6], 16384  }
  0x69   :  { %1601 = vsyncadd [#allocation6], 4294950912 }
  0x6a   :  { %1602 = dma.done.wait [#allocation9], 16384  }
  0x6b   :  { %1603 = vsyncadd [#allocation9], 4294950912 }
  0x6c   :  { %1604 = dma.done.wait [#allocation12], 4096  }
  0x6d   :  { %1605 = vsyncadd [#allocation12], 4294963200  ;;  %v116_v0 = vld [vmem:[#allocation5 + $0x8] sm:$0xff]  ;;  %v118_v1 = vld [vmem:[#allocation5 + $0x18] sm:$0xff]  ;;  %s1618_s18 = smov [#allocation13]  }
  0x6e   :  { %v115_v2 = vld [vmem:[#allocation5] sm:$0xff]  ;;  %v1009_v3 = vpack.c.bf16 %v118_v1, %v116_v0  ;;  %v117_v4 = vld [vmem:[#allocation5 + $0x10] sm:$0xff]  ;;  %v120_v5 = vld [vmem:[#allocation5 + $0x28] sm:$0xff]  ;;  %s961_s21 = sshll.u32 %s1618_s18, 4  ;;  %s962_s21 = int_to_ptr.vmem [resolvable:$true] %s961_s21 }
  0x6f   :  { %v122_v6 = vld [vmem:[#allocation5 + $0x38] sm:$0xff]  ;;  %v1011_v7 = vpack.c.bf16 %v117_v4, %v115_v2  ;;  %v119_v9 = vld [vmem:[#allocation5 + $0x20] sm:$0xff]  ;;  %v121_v10 = vld [vmem:[#allocation5 + $0x30] sm:$0xff]  ;;  %s1576_s22 = scalar_lea.vmem %s962_s21, 128  ;;  %p1581_p7 = scmp.lt.s32.totalorder %s962_s21, %s962_s21 }
  0x70   :  { %v1013_v8 = vpack.c.bf16 %v122_v6, %v120_v5  ;;  %v124_v11 = vld [vmem:[#allocation5 + $0x48] sm:$0xff]  ;;  %1010 = vmatprep.subr.bf16.mxu0 %v1009_v3  ;;  %v126_v12 = vld [vmem:[#allocation5 + $0x58] sm:$0xff]  ;;  %1074 = vmatprep.subr.bf16.mxu1 %v1009_v3  ;;  %v1015_v13 = vpack.c.bf16 %v121_v10, %v119_v9  ;;  %v123_v15 = vld [vmem:[#allocation5 + $0x40] sm:$0xff]  ;;  %p1577_p6 = scmp.ne.s32.totalorder %s962_s21, %s1576_s22  ;;  %p1582_p8 = scmp.lt.s32.totalorder %s1576_s22, %s1576_s22 }
  0x71   :  { %1012 = vmatpush1.bf16.msra.mxu0 %v1011_v7  ;;  %1076 = vmatpush1.bf16.msra.mxu1 %v1011_v7  ;;  %v1017_v14 = vpack.c.bf16 %v126_v12, %v124_v11  ;;  %v125_v16 = vld [vmem:[#allocation5 + $0x50] sm:$0xff]  ;;  %v128_v17 = vld [vmem:[#allocation5 + $0x68] sm:$0xff]  ;;  %v130_v18 = vld [vmem:[#allocation5 + $0x78] sm:$0xff] }
  0x72   :  { %1014 = vmatprep.subr.bf16.mxu0 %v1013_v8  ;;  %1078 = vmatprep.subr.bf16.mxu1 %v1013_v8  ;;  %v1019_v19 = vpack.c.bf16 %v125_v16, %v123_v15  ;;  %v1021_v20 = vpack.c.bf16 %v130_v18, %v128_v17  ;;  %v127_v21 = vld [vmem:[#allocation5 + $0x60] sm:$0xff]  ;;  %v129_v22 = vld [vmem:[#allocation5 + $0x70] sm:$0xff]  ;;  %v132_v23 = vld [vmem:[#allocation5 + $0x88] sm:$0xff]  ;;  %p1583_p9 = por %p1582_p8, %p1581_p7 }
  0x73   :  { %v134_v24 = vld [vmem:[#allocation5 + $0x98] sm:$0xff]  ;;  %v1023_v25 = vpack.c.bf16 %v129_v22, %v127_v21  ;;  %v131_v27 = vld [vmem:[#allocation5 + $0x80] sm:$0xff]  ;;  %v133_v28 = vld [vmem:[#allocation5 + $0x90] sm:$0xff] }
  0x74   :  { %v1025_v26 = vpack.c.bf16 %v134_v24, %v132_v23  ;;  %v136_v29 = vld [vmem:[#allocation5 + $0xa8] sm:$0xff]  ;;  %v138_v30 = vld [vmem:[#allocation5 + $0xb8] sm:$0xff]  ;;  %v1027_v31 = vpack.c.bf16 %v133_v28, %v131_v27  ;;  %v135_v33 = vld [vmem:[#allocation5 + $0xa0] sm:$0xff]  ;;  %p1584_p10 = pnand %p1583_p9, %p1577_p6 }
  0x75   :  { %1016 = vmatpush1.bf16.msra.mxu0 %v1015_v13  ;;  %1080 = vmatpush1.bf16.msra.mxu1 %v1015_v13  ;;  %v1029_v32 = vpack.c.bf16 %v138_v30, %v136_v29  ;;  %v137_v34 = vld [vmem:[#allocation5 + $0xb0] sm:$0xff]  ;;  %v140_v35 = vld [vmem:[#allocation5 + $0xc8] sm:$0xff]  ;;  %v142_v36 = vld [vmem:[#allocation5 + $0xd8] sm:$0xff] }
  0x76   :  { %1018 = vmatprep.subr.bf16.mxu0 %v1017_v14  ;;  %1082 = vmatprep.subr.bf16.mxu1 %v1017_v14  ;;  %v1031_v37 = vpack.c.bf16 %v137_v34, %v135_v33  ;;  %v1033_v38 = vpack.c.bf16 %v142_v36, %v140_v35  ;;  %v139_v39 = vld [vmem:[#allocation5 + $0xc0] sm:$0xff]  ;;  %v141_v40 = vld [vmem:[#allocation5 + $0xd0] sm:$0xff]  ;;  %v1753_v41 = vld [vmem:[#allocation2 + $0x8] sm:$0xff] }
  0x77   :  { %v144_v42 = vld [vmem:[#allocation5 + $0xe8] sm:$0xff]  ;;  %v146_v43 = vld [vmem:[#allocation5 + $0xf8] sm:$0xff]  ;;  %308 = vmatprep.mubr.f32.mxu0 %v1753_v41  ;;  %v1035_v44 = vpack.c.bf16 %v141_v40, %v139_v39  ;;  %v143_v46 = vld [vmem:[#allocation5 + $0xe0] sm:$0xff] }
  0x78   :  { %v1037_v45 = vpack.c.bf16 %v146_v43, %v144_v42  ;;  %v145_v47 = vld [vmem:[#allocation5 + $0xf0] sm:$0xff]  ;;  %v148_v48 = vld [vmem:[#allocation5 + $0x108] sm:$0xff]  ;;  %v150_v49 = vld [vmem:[#allocation5 + $0x118] sm:$0xff] }
  0x79   :  { %1020 = vmatpush1.bf16.msra.mxu0 %v1019_v19  ;;  %1084 = vmatpush1.bf16.msra.mxu1 %v1019_v19  ;;  %v1039_v50 = vpack.c.bf16 %v145_v47, %v143_v46  ;;  %v1041_v51 = vpack.c.bf16 %v150_v49, %v148_v48  ;;  %v147_v52 = vld [vmem:[#allocation5 + $0x100] sm:$0xff]  ;;  %v149_v53 = vld [vmem:[#allocation5 + $0x110] sm:$0xff]  ;;  %v152_v54 = vld [vmem:[#allocation5 + $0x128] sm:$0xff] }
  0x7a   :  { %1022 = vmatprep.subr.bf16.mxu0 %v1021_v20  ;;  %1086 = vmatprep.subr.bf16.mxu1 %v1021_v20  ;;  %v154_v55 = vld [vmem:[#allocation5 + $0x138] sm:$0xff]  ;;  %v1043_v56 = vpack.c.bf16 %v149_v53, %v147_v52  ;;  %v151_v58 = vld [vmem:[#allocation5 + $0x120] sm:$0xff]  ;;  %v153_v59 = vld [vmem:[#allocation5 + $0x130] sm:$0xff] }
  0x7b   :  { %v1045_v57 = vpack.c.bf16 %v154_v55, %v152_v54  ;;  %v156_v60 = vld [vmem:[#allocation5 + $0x148] sm:$0xff]  ;;  %v158_v61 = vld [vmem:[#allocation5 + $0x158] sm:$0xff]  ;;  %v1047_v62 = vpack.c.bf16 %v153_v59, %v151_v58  ;;  %v155_v0 = vld [vmem:[#allocation5 + $0x140] sm:$0xff] }
  0x7c   :  { %v1049_v63 = vpack.c.bf16 %v158_v61, %v156_v60  ;;  %v157_v1 = vld [vmem:[#allocation5 + $0x150] sm:$0xff]  ;;  %v160_v2 = vld [vmem:[#allocation5 + $0x168] sm:$0xff]  ;;  %v162_v3 = vld [vmem:[#allocation5 + $0x178] sm:$0xff] }
  0x7d   :  { %1024 = vmatpush1.bf16.msra.mxu0 %v1023_v25  ;;  %1088 = vmatpush1.bf16.msra.mxu1 %v1023_v25  ;;  %v1051_v4 = vpack.c.bf16 %v157_v1, %v155_v0  ;;  %v1053_v5 = vpack.c.bf16 %v162_v3, %v160_v2  ;;  %v159_v6 = vld [vmem:[#allocation5 + $0x160] sm:$0xff]  ;;  %v161_v7 = vld [vmem:[#allocation5 + $0x170] sm:$0xff]  ;;  %v164_v8 = vld [vmem:[#allocation5 + $0x188] sm:$0xff] }
  0x7e   :  { %1026 = vmatprep.subr.bf16.mxu0 %v1025_v26  ;;  %1090 = vmatprep.subr.bf16.mxu1 %v1025_v26  ;;  %v166_v9 = vld [vmem:[#allocation5 + $0x198] sm:$0xff]  ;;  %v1055_v10 = vpack.c.bf16 %v161_v7, %v159_v6  ;;  %v163_v12 = vld [vmem:[#allocation5 + $0x180] sm:$0xff]  ;;  %v165_v13 = vld [vmem:[#allocation5 + $0x190] sm:$0xff] }
  0x7f   :  { %v1057_v11 = vpack.c.bf16 %v166_v9, %v164_v8  ;;  %v168_v14 = vld [vmem:[#allocation5 + $0x1a8] sm:$0xff]  ;;  %v170_v15 = vld [vmem:[#allocation5 + $0x1b8] sm:$0xff]  ;;  %v1059_v16 = vpack.c.bf16 %v165_v13, %v163_v12  ;;  %v167_v18 = vld [vmem:[#allocation5 + $0x1a0] sm:$0xff] }
  0x80   :  { %v1061_v17 = vpack.c.bf16 %v170_v15, %v168_v14  ;;  %v169_v19 = vld [vmem:[#allocation5 + $0x1b0] sm:$0xff]  ;;  %v172_v20 = vld [vmem:[#allocation5 + $0x1c8] sm:$0xff]  ;;  %v174_v21 = vld [vmem:[#allocation5 + $0x1d8] sm:$0xff] }
  0x81   :  { %1028 = vmatpush1.bf16.msra.mxu0 %v1027_v31  ;;  %1092 = vmatpush1.bf16.msra.mxu1 %v1027_v31  ;;  %v1063_v22 = vpack.c.bf16 %v169_v19, %v167_v18  ;;  %v1065_v23 = vpack.c.bf16 %v174_v21, %v172_v20  ;;  %v171_v24 = vld [vmem:[#allocation5 + $0x1c0] sm:$0xff]  ;;  %v173_v25 = vld [vmem:[#allocation5 + $0x1d0] sm:$0xff]  ;;  %v176_v26 = vld [vmem:[#allocation5 + $0x1e8] sm:$0xff] }
  0x82   :  { %1030 = vmatprep.subr.bf16.mxu0 %v1029_v32  ;;  %1094 = vmatprep.subr.bf16.mxu1 %v1029_v32  ;;  %v178_v27 = vld [vmem:[#allocation5 + $0x1f8] sm:$0xff]  ;;  %v1067_v28 = vpack.c.bf16 %v173_v25, %v171_v24  ;;  %v175_v30 = vld [vmem:[#allocation5 + $0x1e0] sm:$0xff]  ;;  %v177_v31 = vld [vmem:[#allocation5 + $0x1f0] sm:$0xff] }
  0x83   :  { %v1069_v29 = vpack.c.bf16 %v178_v27, %v176_v26  ;;  %v1071_v32 = vpack.c.bf16 %v177_v31, %v175_v30  ;;  %v1756_v33 = vld [vmem:[#allocation2] sm:$0xff]  ;;  %v180_v34 = vld [vmem:[#allocation7 + $0x8] sm:$0xff]  ;;  %v182_v35 = vld [vmem:[#allocation7 + $0x18] sm:$0xff] }
  0x84   :  { %v179_v36 = vld [vmem:[#allocation7] sm:$0xff]  ;;  %v184_v39 = vld [vmem:[#allocation7 + $0x28] sm:$0xff]  ;;  %v186_v40 = vld [vmem:[#allocation7 + $0x38] sm:$0xff] }
  0x85   :  { %1032 = vmatpush1.bf16.msra.mxu0 %v1031_v37  ;;  %1096 = vmatpush1.bf16.msra.mxu1 %v1031_v37  ;;  %v1137_v37 = vpack.c.bf16 %v182_v35, %v180_v34  ;;  %v1141_v43 = vpack.c.bf16 %v186_v40, %v184_v39  ;;  %v188_v46 = vld [vmem:[#allocation7 + $0x48] sm:$0xff]  ;;  %v190_v47 = vld [vmem:[#allocation7 + $0x58] sm:$0xff]  ;;  %v219_v35 = vld [vmem:[#allocation7 + $0x140] sm:$0xff] }
  0x86   :  { %1034 = vmatprep.subr.bf16.mxu0 %v1033_v38  ;;  %1098 = vmatprep.subr.bf16.mxu1 %v1033_v38  ;;  %v181_v38 = vld [vmem:[#allocation7 + $0x10] sm:$0xff]  ;;  %v1145_v49 = vpack.c.bf16 %v190_v47, %v188_v46  ;;  %v192_v52 = vld [vmem:[#allocation7 + $0x68] sm:$0xff]  ;;  %v194_v53 = vld [vmem:[#allocation7 + $0x78] sm:$0xff] }
  0x87   :  { %v1139_v42 = vpack.c.bf16 %v181_v38, %v179_v36  ;;  %v1149_v55 = vpack.c.bf16 %v194_v53, %v192_v52  ;;  %v196_v58 = vld [vmem:[#allocation7 + $0x88] sm:$0xff]  ;;  %v198_v59 = vld [vmem:[#allocation7 + $0x98] sm:$0xff]  ;;  %v221_v36 = vld [vmem:[#allocation7 + $0x150] sm:$0xff] }
  0x88   :  { %v1153_v61 = vpack.c.bf16 %v198_v59, %v196_v58  ;;  %v200_v0 = vld [vmem:[#allocation7 + $0xa8] sm:$0xff]  ;;  %v202_v1 = vld [vmem:[#allocation7 + $0xb8] sm:$0xff]  ;;  %v1179_v39 = vpack.c.bf16 %v221_v36, %v219_v35 }
  0x89   :  { %1036 = vmatpush1.bf16.msra.mxu0 %v1035_v44  ;;  %1100 = vmatpush1.bf16.msra.mxu1 %v1035_v44  ;;  %v183_v44 = vld [vmem:[#allocation7 + $0x20] sm:$0xff]  ;;  %v1157_v3 = vpack.c.bf16 %v202_v1, %v200_v0  ;;  %v204_v6 = vld [vmem:[#allocation7 + $0xc8] sm:$0xff]  ;;  %v206_v7 = vld [vmem:[#allocation7 + $0xd8] sm:$0xff] }
  0x8a   :  { %1038 = vmatprep.subr.bf16.mxu0 %v1037_v45  ;;  %1102 = vmatprep.subr.bf16.mxu1 %v1037_v45  ;;  %v185_v45 = vld [vmem:[#allocation7 + $0x30] sm:$0xff]  ;;  %v1161_v9 = vpack.c.bf16 %v206_v7, %v204_v6  ;;  %v208_v12 = vld [vmem:[#allocation7 + $0xe8] sm:$0xff]  ;;  %v210_v13 = vld [vmem:[#allocation7 + $0xf8] sm:$0xff] }
  0x8b   :  { %v1143_v48 = vpack.c.bf16 %v185_v45, %v183_v44  ;;  %v1165_v15 = vpack.c.bf16 %v210_v13, %v208_v12  ;;  %v212_v18 = vld [vmem:[#allocation7 + $0x108] sm:$0xff]  ;;  %v214_v19 = vld [vmem:[#allocation7 + $0x118] sm:$0xff]  ;;  %v235_v1 = vld [vmem:[#allocation7 + $0x1c0] sm:$0xff] }
  0x8c   :  { %v1169_v21 = vpack.c.bf16 %v214_v19, %v212_v18  ;;  %v216_v24 = vld [vmem:[#allocation7 + $0x128] sm:$0xff]  ;;  %v218_v25 = vld [vmem:[#allocation7 + $0x138] sm:$0xff]  ;;  %v480_v13 = vld [vmem:[#allocation8] sm:$0xff] }
  0x8d   :  { %1040 = vmatpush1.bf16.msra.mxu0 %v1039_v50  ;;  %1104 = vmatpush1.bf16.msra.mxu1 %v1039_v50  ;;  %v187_v50 = vld [vmem:[#allocation7 + $0x40] sm:$0xff]  ;;  %v1173_v27 = vpack.c.bf16 %v218_v25, %v216_v24  ;;  %v220_v30 = vld [vmem:[#allocation7 + $0x148] sm:$0xff]  ;;  %v222_v31 = vld [vmem:[#allocation7 + $0x158] sm:$0xff] }
  0x8e   :  { %1042 = vmatprep.subr.bf16.mxu0 %v1041_v51  ;;  %1106 = vmatprep.subr.bf16.mxu1 %v1041_v51  ;;  %v189_v51 = vld [vmem:[#allocation7 + $0x50] sm:$0xff]  ;;  %v1177_v34 = vpack.c.bf16 %v222_v31, %v220_v30  ;;  %v226_v38 = vld [vmem:[#allocation7 + $0x178] sm:$0xff]  ;;  %v497_v35 = vld [vmem:[#allocation8 + $0x88] sm:$0xff] }
  0x8f   :  { %v1147_v54 = vpack.c.bf16 %v189_v51, %v187_v50  ;;  %v228_v51 = vld [vmem:[#allocation7 + $0x188] sm:$0xff]  ;;  %v230_v52 = vld [vmem:[#allocation7 + $0x198] sm:$0xff] }
  0x90   :  { %v1185_v53 = vpack.c.bf16 %v230_v52, %v228_v51  ;;  %v234_v58 = vld [vmem:[#allocation7 + $0x1b8] sm:$0xff] }
  0x91   :  { %1044 = vmatpush1.bf16.msra.mxu0 %v1043_v56  ;;  %1108 = vmatpush1.bf16.msra.mxu1 %v1043_v56  ;;  %v191_v56 = vld [vmem:[#allocation7 + $0x60] sm:$0xff]  ;;  %v238_v0 = vld [vmem:[#allocation7 + $0x1d8] sm:$0xff] }
  0x92   :  { %1046 = vmatprep.subr.bf16.mxu0 %v1045_v57  ;;  %1110 = vmatprep.subr.bf16.mxu1 %v1045_v57  ;;  %v193_v57 = vld [vmem:[#allocation7 + $0x70] sm:$0xff]  ;;  %v483_v12 = vld [vmem:[#allocation8 + $0x18] sm:$0xff] }
  0x93   :  { %v1151_v60 = vpack.c.bf16 %v193_v57, %v191_v56  ;;  %v232_v57 = vld [vmem:[#allocation7 + $0x1a8] sm:$0xff]  ;;  %v499_v36 = vld [vmem:[#allocation8 + $0x98] sm:$0xff] }
  0x94   :  { %v1189_v59 = vpack.c.bf16 %v234_v58, %v232_v57  ;;  %v507_v51 = vld [vmem:[#allocation8 + $0xd8] sm:$0xff] }
  0x95   :  { %1048 = vmatpush1.bf16.msra.mxu0 %v1047_v62  ;;  %1112 = vmatpush1.bf16.msra.mxu1 %v1047_v62  ;;  %v195_v62 = vld [vmem:[#allocation7 + $0x80] sm:$0xff]  ;;  %v511_v57 = vld [vmem:[#allocation8 + $0xf8] sm:$0xff] }
  0x96   :  { %1050 = vmatprep.subr.bf16.mxu0 %v1049_v63  ;;  %1114 = vmatprep.subr.bf16.mxu1 %v1049_v63  ;;  %v197_v63 = vld [vmem:[#allocation7 + $0x90] sm:$0xff] }
  0x97   :  { %v1155_v2 = vpack.c.bf16 %v197_v63, %v195_v62  ;;  %v236_v62 = vld [vmem:[#allocation7 + $0x1c8] sm:$0xff] }
  0x99   :  { %1052 = vmatpush1.bf16.msra.mxu0 %v1051_v4  ;;  %1116 = vmatpush1.bf16.msra.mxu1 %v1051_v4  ;;  %v199_v4 = vld [vmem:[#allocation7 + $0xa0] sm:$0xff] }
  0x9a   :  { %1054 = vmatprep.subr.bf16.mxu0 %v1053_v5  ;;  %1118 = vmatprep.subr.bf16.mxu1 %v1053_v5  ;;  %v201_v5 = vld [vmem:[#allocation7 + $0xb0] sm:$0xff] }
  0x9b   :  { %v1159_v8 = vpack.c.bf16 %v201_v5, %v199_v4  ;;  %v240_v4 = vld [vmem:[#allocation7 + $0x1e8] sm:$0xff]  ;;  %v242_v5 = vld [vmem:[#allocation7 + $0x1f8] sm:$0xff] }
  0x9c   :  { %v1197_v7 = vpack.c.bf16 %v242_v5, %v240_v4  ;;  %v517_v4 = vld [vmem:[#allocation8 + $0x128] sm:$0xff]  ;;  %v519_v5 = vld [vmem:[#allocation8 + $0x138] sm:$0xff] }
  0x9d   :  { %1056 = vmatpush1.bf16.msra.mxu0 %v1055_v10  ;;  %1120 = vmatpush1.bf16.msra.mxu1 %v1055_v10  ;;  %v203_v10 = vld [vmem:[#allocation7 + $0xc0] sm:$0xff] }
  0x9e   :  { %1058 = vmatprep.subr.bf16.mxu0 %v1057_v11  ;;  %1122 = vmatprep.subr.bf16.mxu1 %v1057_v11  ;;  %v205_v11 = vld [vmem:[#allocation7 + $0xd0] sm:$0xff] }
  0x9f   :  { %v1163_v14 = vpack.c.bf16 %v205_v11, %v203_v10  ;;  %v481_v11 = vld [vmem:[#allocation8 + $0x8] sm:$0xff] }
  0xa1   :  { %1060 = vmatpush1.bf16.msra.mxu0 %v1059_v16  ;;  %1124 = vmatpush1.bf16.msra.mxu1 %v1059_v16  ;;  %v207_v16 = vld [vmem:[#allocation7 + $0xe0] sm:$0xff] }
  0xa2   :  { %1062 = vmatprep.subr.bf16.mxu0 %v1061_v17  ;;  %1126 = vmatprep.subr.bf16.mxu1 %v1061_v17  ;;  %v209_v17 = vld [vmem:[#allocation7 + $0xf0] sm:$0xff] }
  0xa3   :  { %v1167_v20 = vpack.c.bf16 %v209_v17, %v207_v16  ;;  %v485_v16 = vld [vmem:[#allocation8 + $0x28] sm:$0xff]  ;;  %v487_v17 = vld [vmem:[#allocation8 + $0x38] sm:$0xff] }
  0xa4   :  { %v1771_v19 = vpack.c.bf16 %v487_v17, %v485_v16  ;;  %v525_v16 = vld [vmem:[#allocation8 + $0x168] sm:$0xff]  ;;  %v527_v17 = vld [vmem:[#allocation8 + $0x178] sm:$0xff] }
  0xa5   :  { %1064 = vmatpush1.bf16.msra.mxu0 %v1063_v22  ;;  %1128 = vmatpush1.bf16.msra.mxu1 %v1063_v22  ;;  %v211_v22 = vld [vmem:[#allocation7 + $0x100] sm:$0xff] }
  0xa6   :  { %1066 = vmatprep.subr.bf16.mxu0 %v1065_v23  ;;  %1130 = vmatprep.subr.bf16.mxu1 %v1065_v23  ;;  %v213_v23 = vld [vmem:[#allocation7 + $0x110] sm:$0xff] }
  0xa7   :  { %v1171_v26 = vpack.c.bf16 %v213_v23, %v211_v22  ;;  %v489_v22 = vld [vmem:[#allocation8 + $0x48] sm:$0xff]  ;;  %v491_v23 = vld [vmem:[#allocation8 + $0x58] sm:$0xff] }
  0xa8   :  { %v1777_v25 = vpack.c.bf16 %v491_v23, %v489_v22  ;;  %v524_v22 = vld [vmem:[#allocation8 + $0x160] sm:$0xff]  ;;  %v526_v23 = vld [vmem:[#allocation8 + $0x170] sm:$0xff] }
  0xa9   :  { %1068 = vmatpush1.bf16.msra.mxu0 %v1067_v28  ;;  %1132 = vmatpush1.bf16.msra.mxu1 %v1067_v28  ;;  %v215_v28 = vld [vmem:[#allocation7 + $0x120] sm:$0xff] }
  0xaa   :  { %1070 = vmatprep.subr.bf16.mxu0 %v1069_v29  ;;  %1134 = vmatprep.subr.bf16.mxu1 %v1069_v29  ;;  %v217_v29 = vld [vmem:[#allocation7 + $0x130] sm:$0xff] }
  0xad   :  { %1072 = vmatpush1.bf16.msra.mxu0 %v1071_v32  ;;  %1136 = vmatpush1.bf16.msra.mxu1 %v1071_v32  ;;  %v1175_v32 = vpack.c.bf16 %v217_v29, %v215_v28  ;;  %v493_v28 = vld [vmem:[#allocation8 + $0x68] sm:$0xff]  ;;  %v495_v29 = vld [vmem:[#allocation8 + $0x78] sm:$0xff] }
  0xae   :  { %1138 = vmatprep.subr.bf16.mxu0 %v1137_v37  ;;  %v224_v37 = vld [vmem:[#allocation7 + $0x168] sm:$0xff]  ;;  %v1783_v31 = vpack.c.bf16 %v495_v29, %v493_v28  ;;  %v1247_v28 = vpack.c.bf16 %v526_v23, %v524_v22  ;;  %v552_v23 = vld [vmem:[#allocation10 + $0x40] sm:$0xff] }
  0xaf   :  { %v1181_v40 = vpack.c.bf16 %v226_v38, %v224_v37  ;;  %v1789_v38 = vpack.c.bf16 %v499_v36, %v497_v35  ;;  %v533_v35 = vld [vmem:[#allocation8 + $0x1a8] sm:$0xff]  ;;  %v535_v36 = vld [vmem:[#allocation8 + $0x1b8] sm:$0xff] }
  0xb0   :  { %309 = vmatmul.mubr.f32.vlgmr.msra.gmra.mrb[0].mxu0 %v1756_v33 }
  0xb1   :  { %1140 = vmatpush1.bf16.msra.mxu0 %v1139_v42  ;;  %v223_v42 = vld [vmem:[#allocation7 + $0x160] sm:$0xff] }
  0xb2   :  { %1142 = vmatprep.subr.bf16.mxu0 %v1141_v43  ;;  %v225_v43 = vld [vmem:[#allocation7 + $0x170] sm:$0xff] }
  0xb3   :  { %v1183_v44 = vpack.c.bf16 %v225_v43, %v223_v42  ;;  %v501_v42 = vld [vmem:[#allocation8 + $0xa8] sm:$0xff]  ;;  %v503_v43 = vld [vmem:[#allocation8 + $0xb8] sm:$0xff] }
  0xb5   :  { %1144 = vmatpush1.bf16.msra.mxu0 %v1143_v48 }
  0xb6   :  { %1146 = vmatprep.subr.bf16.mxu0 %v1145_v49 }
  0xb9   :  { %1148 = vmatpush1.bf16.msra.mxu0 %v1147_v54  ;;  %v227_v54 = vld [vmem:[#allocation7 + $0x180] sm:$0xff] }
  0xba   :  { %1150 = vmatprep.subr.bf16.mxu0 %v1149_v55  ;;  %v229_v55 = vld [vmem:[#allocation7 + $0x190] sm:$0xff] }
  0xbb   :  { %v1187_v56 = vpack.c.bf16 %v229_v55, %v227_v54  ;;  %v504_v54 = vld [vmem:[#allocation8 + $0xc0] sm:$0xff]  ;;  %v506_v55 = vld [vmem:[#allocation8 + $0xd0] sm:$0xff] }
  0xbc   :  { %v1804_v58 = vpack.c.bf16 %v506_v55, %v504_v54 }
  0xbd   :  { %1152 = vmatpush1.bf16.msra.mxu0 %v1151_v60  ;;  %v231_v60 = vld [vmem:[#allocation7 + $0x1a0] sm:$0xff] }
  0xbe   :  { %1154 = vmatprep.subr.bf16.mxu0 %v1153_v61  ;;  %v233_v61 = vld [vmem:[#allocation7 + $0x1b0] sm:$0xff] }
  0xbf   :  { %v1191_v63 = vpack.c.bf16 %v233_v61, %v231_v60  ;;  %v508_v60 = vld [vmem:[#allocation8 + $0xe0] sm:$0xff]  ;;  %v510_v61 = vld [vmem:[#allocation8 + $0xf0] sm:$0xff] }
  0xc1   :  { %1156 = vmatpush1.bf16.msra.mxu0 %v1155_v2  ;;  %v237_v2 = vld [vmem:[#allocation7 + $0x1d0] sm:$0xff] }
  0xc2   :  { %1158 = vmatprep.subr.bf16.mxu0 %v1157_v3  ;;  %v1193_v3 = vpack.c.bf16 %v238_v0, %v236_v62  ;;  %v1195_v6 = vpack.c.bf16 %v237_v2, %v235_v1  ;;  %v513_v62 = vld [vmem:[#allocation8 + $0x108] sm:$0xff]  ;;  %v1810_v0 = vpack.c.bf16 %v510_v61, %v508_v60  ;;  %v512_v2 = vld [vmem:[#allocation8 + $0x100] sm:$0xff] }
  0xc5   :  { %1160 = vmatpush1.bf16.msra.mxu0 %v1159_v8  ;;  %v239_v8 = vld [vmem:[#allocation7 + $0x1e0] sm:$0xff] }
  0xc6   :  { %1162 = vmatprep.subr.bf16.mxu0 %v1161_v9  ;;  %v241_v9 = vld [vmem:[#allocation7 + $0x1f0] sm:$0xff] }
  0xc7   :  { %v1199_v10 = vpack.c.bf16 %v241_v9, %v239_v8  ;;  %v516_v8 = vld [vmem:[#allocation8 + $0x120] sm:$0xff]  ;;  %v518_v9 = vld [vmem:[#allocation8 + $0x130] sm:$0xff] }
  0xc9   :  { %1164 = vmatpush1.bf16.msra.mxu0 %v1163_v14  ;;  %v1201_v14 = vpack.c.bf16 %v483_v12, %v481_v11  ;;  %v523_v11 = vld [vmem:[#allocation8 + $0x158] sm:$0xff]  ;;  %v1239_v12 = vpack.c.bf16 %v518_v9, %v516_v8  ;;  %v545_v8 = vld [vmem:[#allocation10 + $0x8] sm:$0xff] }
  0xca   :  { %1166 = vmatprep.subr.bf16.mxu0 %v1165_v15  ;;  %v482_v15 = vld [vmem:[#allocation8 + $0x10] sm:$0xff]  ;;  %v547_v9 = vld [vmem:[#allocation10 + $0x18] sm:$0xff] }
  0xcb   :  { %v1769_v18 = vpack.c.bf16 %v482_v15, %v480_v13  ;;  %1202 = vmatprep.subr.bf16.mxu1 %v1201_v14  ;;  %v522_v15 = vld [vmem:[#allocation8 + $0x150] sm:$0xff] }
  0xcd   :  { %1168 = vmatpush1.bf16.msra.mxu0 %v1167_v20  ;;  %v484_v20 = vld [vmem:[#allocation8 + $0x20] sm:$0xff] }
  0xce   :  { %1170 = vmatprep.subr.bf16.mxu0 %v1169_v21  ;;  %v486_v21 = vld [vmem:[#allocation8 + $0x30] sm:$0xff] }
  0xcf   :  { %v1774_v24 = vpack.c.bf16 %v486_v21, %v484_v20  ;;  %v1245_v21 = vpack.c.bf16 %v527_v17, %v525_v16  ;;  %v548_v17 = vld [vmem:[#allocation10 + $0x20] sm:$0xff] }
  0xd1   :  { %1172 = vmatpush1.bf16.msra.mxu0 %v1171_v26  ;;  %v488_v26 = vld [vmem:[#allocation8 + $0x40] sm:$0xff] }
  0xd2   :  { %1174 = vmatprep.subr.bf16.mxu0 %v1173_v27  ;;  %v490_v27 = vld [vmem:[#allocation8 + $0x50] sm:$0xff] }
  0xd3   :  { %v1780_v30 = vpack.c.bf16 %v490_v27, %v488_v26  ;;  %v529_v26 = vld [vmem:[#allocation8 + $0x188] sm:$0xff]  ;;  %v531_v27 = vld [vmem:[#allocation8 + $0x198] sm:$0xff] }
  0xd4   :  { %v1249_v29 = vpack.c.bf16 %v531_v27, %v529_v26  ;;  %v554_v26 = vld [vmem:[#allocation10 + $0x50] sm:$0xff]  ;;  %v557_v27 = vld [vmem:[#allocation10 + $0x68] sm:$0xff] }
  0xd5   :  { %1176 = vmatpush1.bf16.msra.mxu0 %v1175_v32  ;;  %v492_v32 = vld [vmem:[#allocation8 + $0x60] sm:$0xff] }
  0xd6   :  { %1178 = vmatprep.subr.bf16.mxu0 %v1177_v34  ;;  %v494_v34 = vld [vmem:[#allocation8 + $0x70] sm:$0xff] }
  0xd7   :  { %v1786_v37 = vpack.c.bf16 %v494_v34, %v492_v32  ;;  %v528_v32 = vld [vmem:[#allocation8 + $0x180] sm:$0xff]  ;;  %v530_v34 = vld [vmem:[#allocation8 + $0x190] sm:$0xff] }
  0xd9   :  { %1180 = vmatpush1.bf16.msra.mxu0 %v1179_v39  ;;  %v496_v39 = vld [vmem:[#allocation8 + $0x80] sm:$0xff] }
  0xda   :  { %1182 = vmatprep.subr.bf16.mxu0 %v1181_v40  ;;  %v498_v40 = vld [vmem:[#allocation8 + $0x90] sm:$0xff] }
  0xdd   :  { %1184 = vmatpush1.bf16.msra.mxu0 %v1183_v44  ;;  %v1792_v44 = vpack.c.bf16 %v498_v40, %v496_v39  ;;  %v1251_v39 = vpack.c.bf16 %v530_v34, %v528_v32  ;;  %v1253_v40 = vpack.c.bf16 %v535_v36, %v533_v35  ;;  %v556_v34 = vld [vmem:[#allocation10 + $0x60] sm:$0xff]  ;;  %v558_v35 = vld [vmem:[#allocation10 + $0x70] sm:$0xff]  ;;  %v561_v36 = vld [vmem:[#allocation10 + $0x88] sm:$0xff] }
  0xde   :  { %1186 = vmatprep.subr.bf16.mxu0 %v1185_v53 }
  0xe1   :  { %1188 = vmatpush1.bf16.msra.mxu0 %v1187_v56  ;;  %v509_v56 = vld [vmem:[#allocation8 + $0xe8] sm:$0xff] }
  0xe2   :  { %1190 = vmatprep.subr.bf16.mxu0 %v1189_v59  ;;  %v1807_v59 = vpack.c.bf16 %v511_v57, %v509_v56 }
  0xe5   :  { %1192 = vmatpush1.bf16.msra.mxu0 %v1191_v63  ;;  %v515_v63 = vld [vmem:[#allocation8 + $0x118] sm:$0xff] }
  0xe6   :  { %1194 = vmatprep.subr.bf16.mxu0 %v1193_v3  ;;  %v1813_v1 = vpack.c.bf16 %v515_v63, %v513_v62  ;;  %v514_v3 = vld [vmem:[#allocation8 + $0x110] sm:$0xff] }
  0xe9   :  { %1196 = vmatpush1.bf16.msra.mxu0 %v1195_v6  ;;  %v1816_v6 = vpack.c.bf16 %v514_v3, %v512_v2 }
  0xea   :  { %1198 = vmatprep.subr.bf16.mxu0 %v1197_v7  ;;  %v1819_v7 = vpack.c.bf16 %v519_v5, %v517_v4 }
  0xed   :  { %1200 = vmatpush1.bf16.msra.mxu0 %v1199_v10  ;;  %v521_v10 = vld [vmem:[#allocation8 + $0x148] sm:$0xff] }
  0xee   :  { %1266 = vmatprep.subr.bf16.mxu0 %v1201_v14  ;;  %v1241_v13 = vpack.c.bf16 %v523_v11, %v521_v10  ;;  %v520_v14 = vld [vmem:[#allocation8 + $0x140] sm:$0xff]  ;;  %v1329_v11 = vpack.c.bf16 %v547_v9, %v545_v8  ;;  %v585_v8 = vld [vmem:[#allocation10 + $0x148] sm:$0xff]  ;;  %v587_v9 = vld [vmem:[#allocation10 + $0x158] sm:$0xff] }
  0xef   :  { %v1243_v20 = vpack.c.bf16 %v522_v15, %v520_v14  ;;  %v544_v10 = vld [vmem:[#allocation10] sm:$0xff]  ;;  %v551_v14 = vld [vmem:[#allocation10 + $0x38] sm:$0xff] }
 0x183   :  { %v310_v45 = vpop.f32.mrb[0].mxu0 }
 0x184   :  { %v1760_v46 = vsub.f32 %v1756_v33, %v310_v45  ;;  %v312_v47 = vpop.f32.mrb[1].mxu0  ;;  %v1795_v45 = vpack.c.bf16 %v503_v43, %v501_v42  ;;  %v532_v42 = vld [vmem:[#allocation8 + $0x1a0] sm:$0xff]  ;;  %v534_v43 = vld [vmem:[#allocation8 + $0x1b0] sm:$0xff] }
 0x185   :  { %v1763_v48 = vsub.f32 %v1753_v41, %v312_v47  ;;  %v500_v47 = vld [vmem:[#allocation8 + $0xa0] sm:$0xff] }
 0x186   :  { %v317_v50 = vmul.f32 %v1760_v46, %v1760_v46 }
 0x187   :  { %v318_v49 = vmul.f32 %v1763_v48, %v1763_v48 }
 0x189   :  { %383 = vmatprep.mubr.f32.mxu1 %v318_v49  ;;  %v502_v49 = vld [vmem:[#allocation8 + $0xb0] sm:$0xff] }
 0x18a   :  { %384 = vmatmul.mubr.f32.vlgmr.msra.gmra.mrb[0].mxu1 %v317_v50  ;;  %v505_v50 = vld [vmem:[#allocation8 + $0xc8] sm:$0xff]  ;;  %v1798_v52 = vpack.c.bf16 %v502_v49, %v500_v47  ;;  %v1255_v47 = vpack.c.bf16 %v534_v43, %v532_v42  ;;  %v560_v43 = vld [vmem:[#allocation10 + $0x80] sm:$0xff] }
 0x18b   :  { %1204 = vmatpush1.bf16.msra.mxu1 %v1769_v18  ;;  %v1801_v53 = vpack.c.bf16 %v507_v51, %v505_v50 }
 0x18c   :  { %1206 = vmatprep.subr.bf16.mxu1 %v1771_v19 }
 0x18f   :  { %1208 = vmatpush1.bf16.msra.mxu1 %v1774_v24 }
 0x190   :  { %1210 = vmatprep.subr.bf16.mxu1 %v1777_v25 }
 0x193   :  { %1212 = vmatpush1.bf16.msra.mxu1 %v1780_v30 }
 0x194   :  { %1214 = vmatprep.subr.bf16.mxu1 %v1783_v31 }
 0x197   :  { %1216 = vmatpush1.bf16.msra.mxu1 %v1786_v37 }
 0x198   :  { %1218 = vmatprep.subr.bf16.mxu1 %v1789_v38 }
 0x19b   :  { %1220 = vmatpush1.bf16.msra.mxu1 %v1792_v44 }
 0x19c   :  { %1222 = vmatprep.subr.bf16.mxu1 %v1795_v45 }
 0x19f   :  { %1224 = vmatpush1.bf16.msra.mxu1 %v1798_v52 }
 0x1a0   :  { %1226 = vmatprep.subr.bf16.mxu1 %v1801_v53 }
 0x1a3   :  { %1228 = vmatpush1.bf16.msra.mxu1 %v1804_v58 }
 0x1a4   :  { %1230 = vmatprep.subr.bf16.mxu1 %v1807_v59 }
 0x1a7   :  { %1232 = vmatpush1.bf16.msra.mxu1 %v1810_v0 }
 0x1a8   :  { %1234 = vmatprep.subr.bf16.mxu1 %v1813_v1 }
 0x1ab   :  { %1236 = vmatpush1.bf16.msra.mxu1 %v1816_v6 }
 0x1ac   :  { %1238 = vmatprep.subr.bf16.mxu1 %v1819_v7 }
 0x1af   :  { %1240 = vmatpush1.bf16.msra.mxu1 %v1239_v12 }
 0x1b0   :  { %1242 = vmatprep.subr.bf16.mxu1 %v1241_v13 }
 0x1b3   :  { %1244 = vmatpush1.bf16.msra.mxu1 %v1243_v20 }
 0x1b4   :  { %1246 = vmatprep.subr.bf16.mxu1 %v1245_v21 }
 0x1b7   :  { %1248 = vmatpush1.bf16.msra.mxu1 %v1247_v28 }
 0x1b8   :  { %1250 = vmatprep.subr.bf16.mxu1 %v1249_v29 }
 0x1bb   :  { %1252 = vmatpush1.bf16.msra.mxu1 %v1251_v39 }
 0x1bc   :  { %1254 = vmatprep.subr.bf16.mxu1 %v1253_v40 }
 0x1bf   :  { %1256 = vmatpush1.bf16.msra.mxu1 %v1255_v47 }
 0x25d   :  { %v385_v49 = vpop.f32.mrb[0].mxu1 }
 0x25e   :  { %v386_v50 = vadd.f32 1e-05, %v385_v49  ;;  %v387_v51 = vpop.f32.mrb[1].mxu1  ;;  %v565_v49 = vld [vmem:[#allocation10 + $0xa8] sm:$0xff] }
 0x25f   :  { %v388_v54 = vadd.f32 1e-05, %v387_v51 }
 0x260   :  { %1436 = vrsqrt.f32 %v386_v50  ;;  %v567_v50 = vld [vmem:[#allocation10 + $0xb8] sm:$0xff] }
 0x261   :  { %1438 = vrsqrt.f32 %v388_v54  ;;  %v1349_v54 = vpack.c.bf16 %v567_v50, %v565_v49  ;;  %v598_v49 = vld [vmem:[#allocation10 + $0x1b0] sm:$0xff]  ;;  %v601_v50 = vld [vmem:[#allocation10 + $0x1c8] sm:$0xff] }
 0x26a   :  { %v1437_v55 = vpop.eup %1436 }
 0x26b   :  { %v1439_v56 = vpop.eup %1438  ;;  %v392_v60 = vmul.f32 %v1437_v55, %v1760_v46  ;;  %v537_v46 = vld [vmem:[#allocation8 + $0x1c8] sm:$0xff]  ;;  %v564_v55 = vld [vmem:[#allocation10 + $0xa0] sm:$0xff] }
 0x26c   :  { %v393_v57 = vmul.f32 %v1439_v56, %v1763_v48  ;;  %v539_v48 = vld [vmem:[#allocation8 + $0x1d8] sm:$0xff]  ;;  %v566_v56 = vld [vmem:[#allocation10 + $0xb0] sm:$0xff] }
 0x26e   :  { %469 = vmatprep.mubr.f32.mxu0 %v393_v57  ;;  %v569_v57 = vld [vmem:[#allocation10 + $0xc8] sm:$0xff] }
 0x26f   :  { %470 = vmatmul.mubr.f32.vlgmr.msra.gmra.mrb[2].mxu0 %v392_v60  ;;  %v571_v60 = vld [vmem:[#allocation10 + $0xd8] sm:$0xff] }
 0x270   :  { %1268 = vmatpush1.bf16.msra.mxu0 %v1769_v18  ;;  %v1257_v18 = vpack.c.bf16 %v539_v48, %v537_v46  ;;  %v1351_v46 = vpack.c.bf16 %v566_v56, %v564_v55  ;;  %v1353_v48 = vpack.c.bf16 %v571_v60, %v569_v57  ;;  %v600_v55 = vld [vmem:[#allocation10 + $0x1c0] sm:$0xff]  ;;  %v602_v56 = vld [vmem:[#allocation10 + $0x1d0] sm:$0xff]  ;;  %v605_v60 = vld [vmem:[#allocation10 + $0x1e8] sm:$0xff] }
 0x271   :  { %1270 = vmatprep.subr.bf16.mxu0 %v1771_v19  ;;  %v536_v19 = vld [vmem:[#allocation8 + $0x1c0] sm:$0xff] }
 0x272   :  { %1258 = vmatprep.subr.bf16.mxu1 %v1257_v18 }
 0x274   :  { %1272 = vmatpush1.bf16.msra.mxu0 %v1774_v24  ;;  %v538_v24 = vld [vmem:[#allocation8 + $0x1d0] sm:$0xff] }
 0x275   :  { %1274 = vmatprep.subr.bf16.mxu0 %v1777_v25  ;;  %v1259_v25 = vpack.c.bf16 %v538_v24, %v536_v19  ;;  %v570_v19 = vld [vmem:[#allocation10 + $0xd0] sm:$0xff]  ;;  %v573_v24 = vld [vmem:[#allocation10 + $0xe8] sm:$0xff] }
 0x277   :  { %1260 = vmatpush1.bf16.msra.mxu1 %v1259_v25 }
 0x278   :  { %1276 = vmatpush1.bf16.msra.mxu0 %v1780_v30  ;;  %v541_v30 = vld [vmem:[#allocation8 + $0x1e8] sm:$0xff] }
 0x279   :  { %1278 = vmatprep.subr.bf16.mxu0 %v1783_v31  ;;  %v543_v31 = vld [vmem:[#allocation8 + $0x1f8] sm:$0xff] }
 0x27c   :  { %1280 = vmatpush1.bf16.msra.mxu0 %v1786_v37  ;;  %v1261_v37 = vpack.c.bf16 %v543_v31, %v541_v30 }
 0x27d   :  { %1282 = vmatprep.subr.bf16.mxu0 %v1789_v38  ;;  %v540_v38 = vld [vmem:[#allocation8 + $0x1e0] sm:$0xff] }
 0x27e   :  { %1262 = vmatprep.subr.bf16.mxu1 %v1261_v37 }
 0x280   :  { %1284 = vmatpush1.bf16.msra.mxu0 %v1792_v44  ;;  %v542_v44 = vld [vmem:[#allocation8 + $0x1f0] sm:$0xff] }
 0x281   :  { %1286 = vmatprep.subr.bf16.mxu0 %v1795_v45  ;;  %v1263_v45 = vpack.c.bf16 %v542_v44, %v540_v38  ;;  %v574_v38 = vld [vmem:[#allocation10 + $0xf0] sm:$0xff]  ;;  %v577_v44 = vld [vmem:[#allocation10 + $0x108] sm:$0xff] }
 0x283   :  { %1264 = vmatpush1.bf16.msra.mxu1 %v1263_v45 }
 0x284   :  { %1288 = vmatpush1.bf16.msra.mxu0 %v1798_v52  ;;  %v395_v52 = vlaneseq  ;;  %1330 = vmatprep.subr.bf16.mxu1 %v1329_v11  ;;  %v1369_v11 = vpack.c.bf16 %v587_v9, %v585_v8  ;;  %v850_v8 = vld [vmem:[#allocation11 + $0x28] sm:$0xff]  ;;  %v867_v9 = vld [vmem:[#allocation11 + $0xb0] sm:$0xff] }
 0x285   :  { %1290 = vmatprep.subr.bf16.mxu0 %v1801_v53 }
 0x286   :  { %v1843_v53 = vshrl.u32 %v395_v52, 7 }
 0x288   :  { %1292 = vmatpush1.bf16.msra.mxu0 %v1804_v58  ;;  %v397_v58 = vsub.s32 0, %v1843_v53  ;;  %v401_v61 = vsub.s32 1, %v1843_v53 }
 0x289   :  { %1294 = vmatprep.subr.bf16.mxu0 %v1807_v59  ;;  %v243_v59 = vld [vmem:[%s1901_s3] sm:$0x3] }
 0x28a   :  { %v398_v62 = vrot.slane %v243_v59, %v397_v58  ;;  %v402_v63 = vrot.slane %v243_v59, %v401_v61 }
 0x28c   :  { %1296 = vmatpush1.bf16.msra.mxu0 %v1810_v0 }
 0x28d   :  { %1298 = vmatprep.subr.bf16.mxu0 %v1813_v1 }
 0x290   :  { %1300 = vmatpush1.bf16.msra.mxu0 %v1816_v6 }
 0x291   :  { %1302 = vmatprep.subr.bf16.mxu0 %v1819_v7 }
 0x294   :  { %1304 = vmatpush1.bf16.msra.mxu0 %v1239_v12  ;;  %v546_v12 = vld [vmem:[#allocation10 + $0x10] sm:$0xff] }
 0x295   :  { %1306 = vmatprep.subr.bf16.mxu0 %v1241_v13  ;;  %v549_v13 = vld [vmem:[#allocation10 + $0x28] sm:$0xff]  ;;  %v1331_v15 = vpack.c.bf16 %v546_v12, %v544_v10  ;;  %v584_v12 = vld [vmem:[#allocation10 + $0x140] sm:$0xff] }
 0x296   :  { %v1333_v16 = vpack.c.bf16 %v551_v14, %v549_v13  ;;  %v586_v13 = vld [vmem:[#allocation10 + $0x150] sm:$0xff]  ;;  %v589_v14 = vld [vmem:[#allocation10 + $0x168] sm:$0xff] }
 0x298   :  { %1308 = vmatpush1.bf16.msra.mxu0 %v1243_v20  ;;  %v550_v20 = vld [vmem:[#allocation10 + $0x30] sm:$0xff] }
 0x299   :  { %1310 = vmatprep.subr.bf16.mxu0 %v1245_v21  ;;  %v555_v21 = vld [vmem:[#allocation10 + $0x58] sm:$0xff] }
 0x29c   :  { %1312 = vmatpush1.bf16.msra.mxu0 %v1247_v28  ;;  %v559_v28 = vld [vmem:[#allocation10 + $0x78] sm:$0xff] }
 0x29d   :  { %1314 = vmatprep.subr.bf16.mxu0 %v1249_v29  ;;  %v1339_v29 = vpack.c.bf16 %v554_v26, %v552_v23  ;;  %v1341_v32 = vpack.c.bf16 %v559_v28, %v557_v27 }
 0x2a0   :  { %1316 = vmatpush1.bf16.msra.mxu0 %v1251_v39  ;;  %v563_v39 = vld [vmem:[#allocation10 + $0x98] sm:$0xff] }
 0x2a1   :  { %1318 = vmatprep.subr.bf16.mxu0 %v1253_v40  ;;  %v1343_v40 = vpack.c.bf16 %v558_v35, %v556_v34  ;;  %v1345_v42 = vpack.c.bf16 %v563_v39, %v561_v36  ;;  %v592_v35 = vld [vmem:[#allocation10 + $0x180] sm:$0xff]  ;;  %v594_v36 = vld [vmem:[#allocation10 + $0x190] sm:$0xff] }
 0x2a2   :  { %v1379_v39 = vpack.c.bf16 %v594_v36, %v592_v35 }
 0x2a4   :  { %1320 = vmatpush1.bf16.msra.mxu0 %v1255_v47  ;;  %v562_v47 = vld [vmem:[#allocation10 + $0x90] sm:$0xff] }
 0x2a5   :  { %1322 = vmatprep.subr.bf16.mxu0 %v1257_v18  ;;  %v1347_v51 = vpack.c.bf16 %v562_v47, %v560_v43  ;;  %v568_v18 = vld [vmem:[#allocation10 + $0xc0] sm:$0xff] }
 0x2a6   :  { %v1355_v30 = vpack.c.bf16 %v570_v19, %v568_v18  ;;  %v596_v47 = vld [vmem:[#allocation10 + $0x1a0] sm:$0xff] }
 0x2a7   :  { %v604_v19 = vld [vmem:[#allocation10 + $0x1e0] sm:$0xff] }
 0x2a8   :  { %1324 = vmatpush1.bf16.msra.mxu0 %v1259_v25  ;;  %v575_v25 = vld [vmem:[#allocation10 + $0xf8] sm:$0xff] }
 0x2a9   :  { %1326 = vmatprep.subr.bf16.mxu0 %v1261_v37  ;;  %v1357_v31 = vpack.c.bf16 %v575_v25, %v573_v24  ;;  %v572_v37 = vld [vmem:[#allocation10 + $0xe0] sm:$0xff]  ;;  %v606_v24 = vld [vmem:[#allocation10 + $0x1f0] sm:$0xff] }
 0x2aa   :  { %v1359_v52 = vpack.c.bf16 %v574_v38, %v572_v37  ;;  %v1391_v25 = vpack.c.bf16 %v606_v24, %v604_v19  ;;  %v845_v37 = vld [vmem:[#allocation11] sm:$0xff]  ;;  %v860_v19 = vld [vmem:[#allocation11 + $0x78] sm:$0xff] }
 0x2ac   :  { %1328 = vmatpush1.bf16.msra.mxu0 %v1263_v45  ;;  %v579_v45 = vld [vmem:[#allocation10 + $0x118] sm:$0xff] }
 0x2ad   :  { %v1361_v59 = vpack.c.bf16 %v579_v45, %v577_v44  ;;  %v846_v44 = vld [vmem:[#allocation11 + $0x8] sm:$0xff]  ;;  %v863_v45 = vld [vmem:[#allocation11 + $0x90] sm:$0xff] }
 0x342   :  { %v471_v0 = vpop.f32.mrb[2].mxu0 }
 0x343   :  { %v472_v1 = vadd.f32 %v471_v0, %v398_v62  ;;  %v473_v2 = vpop.f32.mrb[3].mxu0  ;;  %v576_v62 = vld [vmem:[#allocation10 + $0x100] sm:$0xff]  ;;  %v581_v0 = vld [vmem:[#allocation10 + $0x128] sm:$0xff] }
 0x344   :  { %v474_v3 = vadd.f32 %v473_v2, %v402_v63  ;;  %v578_v63 = vld [vmem:[#allocation10 + $0x110] sm:$0xff] }
 0x345   :  { %v476_v4 = vmax.f32 %v472_v1, 0.0  ;;  %v583_v1 = vld [vmem:[#allocation10 + $0x138] sm:$0xff]  ;;  %v1363_v2 = vpack.c.bf16 %v578_v63, %v576_v62  ;;  %v847_v63 = vld [vmem:[#allocation11 + $0x10] sm:$0xff] }
 0x346   :  { %v477_v5 = vmax.f32 %v474_v3, 0.0  ;;  %v1365_v3 = vpack.c.bf16 %v583_v1, %v581_v0  ;;  %v848_v0 = vld [vmem:[#allocation11 + $0x18] sm:$0xff]  ;;  %v865_v1 = vld [vmem:[#allocation11 + $0xa0] sm:$0xff] }
 0x347   :  { %v1858_v7 = vadd.f32 %v476_v4, %v1756_v33  ;;  %v1335_v33 = vpack.c.bf16 %v550_v20, %v548_v17  ;;  %v580_v4 = vld [vmem:[#allocation10 + $0x120] sm:$0xff] }
 0x348   :  { %v1855_v6 = vadd.f32 %v477_v5, %v1753_v41  ;;  %v553_v41 = vld [vmem:[#allocation10 + $0x48] sm:$0xff]  ;;  %v582_v5 = vld [vmem:[#allocation10 + $0x130] sm:$0xff]  ;;  %v588_v20 = vld [vmem:[#allocation10 + $0x160] sm:$0xff] }
 0x349   :  { %v1337_v22 = vpack.c.bf16 %v555_v21, %v553_v41  ;;  %v1367_v10 = vpack.c.bf16 %v582_v5, %v580_v4  ;;  %v590_v41 = vld [vmem:[#allocation10 + $0x170] sm:$0xff]  ;;  %v849_v5 = vld [vmem:[#allocation11 + $0x20] sm:$0xff] }
 0x34a   :  { %673 = vmatprep.mubr.f32.mxu1 %v1855_v6  ;;  %v1375_v21 = vpack.c.bf16 %v590_v41, %v588_v20  ;;  %v853_v41 = vld [vmem:[#allocation11 + $0x40] sm:$0xff] }
 0x34b   :  { %674 = vmatmul.mubr.f32.vlgmr.msra.gmra.mrb[2].mxu1 %v1858_v7 }
 0x34c   :  { %1332 = vmatpush1.bf16.msra.mxu1 %v1331_v15  ;;  %v591_v15 = vld [vmem:[#allocation10 + $0x178] sm:$0xff] }
 0x34d   :  { %1334 = vmatprep.subr.bf16.mxu1 %v1333_v16  ;;  %v1371_v16 = vpack.c.bf16 %v586_v13, %v584_v12  ;;  %v1373_v17 = vpack.c.bf16 %v591_v15, %v589_v14  ;;  %v851_v13 = vld [vmem:[#allocation11 + $0x30] sm:$0xff]  ;;  %v852_v14 = vld [vmem:[#allocation11 + $0x38] sm:$0xff]  ;;  %v869_v15 = vld [vmem:[#allocation11 + $0xc0] sm:$0xff] }
 0x350   :  { %1336 = vmatpush1.bf16.msra.mxu1 %v1335_v33 }
 0x351   :  { %1338 = vmatprep.subr.bf16.mxu1 %v1337_v22 }
 0x354   :  { %1340 = vmatpush1.bf16.msra.mxu1 %v1339_v29  ;;  %v593_v29 = vld [vmem:[#allocation10 + $0x188] sm:$0xff] }
 0x355   :  { %1342 = vmatprep.subr.bf16.mxu1 %v1341_v32  ;;  %v595_v32 = vld [vmem:[#allocation10 + $0x198] sm:$0xff] }
 0x356   :  { %v1377_v34 = vpack.c.bf16 %v595_v32, %v593_v29  ;;  %v855_v29 = vld [vmem:[#allocation11 + $0x50] sm:$0xff]  ;;  %v856_v32 = vld [vmem:[#allocation11 + $0x58] sm:$0xff] }
 0x358   :  { %1344 = vmatpush1.bf16.msra.mxu1 %v1343_v40  ;;  %v597_v40 = vld [vmem:[#allocation10 + $0x1a8] sm:$0xff] }
 0x359   :  { %1346 = vmatprep.subr.bf16.mxu1 %v1345_v42  ;;  %v599_v42 = vld [vmem:[#allocation10 + $0x1b8] sm:$0xff] }
 0x35a   :  { %v1381_v43 = vpack.c.bf16 %v599_v42, %v597_v40 }
 0x35c   :  { %1348 = vmatpush1.bf16.msra.mxu1 %v1347_v51  ;;  %v1383_v51 = vpack.c.bf16 %v598_v49, %v596_v47 }
 0x35d   :  { %1350 = vmatprep.subr.bf16.mxu1 %v1349_v54  ;;  %v603_v54 = vld [vmem:[#allocation10 + $0x1d8] sm:$0xff] }
 0x35e   :  { %v1385_v57 = vpack.c.bf16 %v603_v54, %v601_v50  ;;  %v873_v50 = vld [vmem:[#allocation11 + $0xe0] sm:$0xff] }
 0x360   :  { %1352 = vmatpush1.bf16.msra.mxu1 %v1351_v46  ;;  %v607_v46 = vld [vmem:[#allocation10 + $0x1f8] sm:$0xff] }
 0x361   :  { %1354 = vmatprep.subr.bf16.mxu1 %v1353_v48  ;;  %v1387_v48 = vpack.c.bf16 %v602_v56, %v600_v55  ;;  %v1389_v18 = vpack.c.bf16 %v607_v46, %v605_v60  ;;  %v857_v55 = vld [vmem:[#allocation11 + $0x60] sm:$0xff]  ;;  %v858_v56 = vld [vmem:[#allocation11 + $0x68] sm:$0xff]  ;;  %v875_v60 = vld [vmem:[#allocation11 + $0xf0] sm:$0xff] }
 0x362   :  { %v876_v46 = vld [vmem:[#allocation11 + $0xf8] sm:$0xff] }
 0x364   :  { %1356 = vmatpush1.bf16.msra.mxu1 %v1355_v30  ;;  %v861_v30 = vld [vmem:[#allocation11 + $0x80] sm:$0xff] }
 0x365   :  { %1358 = vmatprep.subr.bf16.mxu1 %v1357_v31  ;;  %v862_v31 = vld [vmem:[#allocation11 + $0x88] sm:$0xff] }
 0x366   :  { %v1393_v38 = vpack.c.bf16 %v862_v31, %v861_v30 }
 0x368   :  { %1360 = vmatpush1.bf16.msra.mxu1 %v1359_v52  ;;  %v864_v52 = vld [vmem:[#allocation11 + $0x98] sm:$0xff]  ;;  %1394 = vmatprep.subr.bf16.mxu0 %v1393_v38 }
 0x369   :  { %1362 = vmatprep.subr.bf16.mxu1 %v1361_v59  ;;  %v1395_v59 = vpack.c.bf16 %v846_v44, %v845_v37  ;;  %v1397_v62 = vpack.c.bf16 %v864_v52, %v863_v45 }
 0x36c   :  { %1364 = vmatpush1.bf16.msra.mxu1 %v1363_v2  ;;  %v866_v2 = vld [vmem:[#allocation11 + $0xa8] sm:$0xff] }
 0x36d   :  { %1366 = vmatprep.subr.bf16.mxu1 %v1365_v3  ;;  %v1399_v3 = vpack.c.bf16 %v848_v0, %v847_v63  ;;  %v1401_v4 = vpack.c.bf16 %v866_v2, %v865_v1 }
 0x370   :  { %1368 = vmatpush1.bf16.msra.mxu1 %v1367_v10  ;;  %v868_v10 = vld [vmem:[#allocation11 + $0xb8] sm:$0xff] }
 0x371   :  { %1370 = vmatprep.subr.bf16.mxu1 %v1369_v11  ;;  %v1403_v11 = vpack.c.bf16 %v850_v8, %v849_v5  ;;  %v1405_v12 = vpack.c.bf16 %v868_v10, %v867_v9 }
 0x374   :  { %1372 = vmatpush1.bf16.msra.mxu1 %v1371_v16  ;;  %v870_v16 = vld [vmem:[#allocation11 + $0xc8] sm:$0xff] }
 0x375   :  { %1374 = vmatprep.subr.bf16.mxu1 %v1373_v17  ;;  %v1407_v17 = vpack.c.bf16 %v852_v14, %v851_v13  ;;  %v1409_v20 = vpack.c.bf16 %v870_v16, %v869_v15 }
 0x378   :  { %1376 = vmatpush1.bf16.msra.mxu1 %v1375_v21  ;;  %v854_v21 = vld [vmem:[#allocation11 + $0x48] sm:$0xff] }
 0x379   :  { %1378 = vmatprep.subr.bf16.mxu1 %v1377_v34  ;;  %v1415_v34 = vpack.c.bf16 %v856_v32, %v855_v29 }
 0x37c   :  { %1380 = vmatpush1.bf16.msra.mxu1 %v1379_v39 }
 0x37d   :  { %1382 = vmatprep.subr.bf16.mxu1 %v1381_v43 }
 0x380   :  { %1384 = vmatpush1.bf16.msra.mxu1 %v1383_v51  ;;  %v874_v51 = vld [vmem:[#allocation11 + $0xe8] sm:$0xff] }
 0x381   :  { %1386 = vmatprep.subr.bf16.mxu1 %v1385_v57  ;;  %v1417_v54 = vpack.c.bf16 %v874_v51, %v873_v50  ;;  %v1419_v57 = vpack.c.bf16 %v858_v56, %v857_v55 }
 0x384   :  { %1388 = vmatpush1.bf16.msra.mxu1 %v1387_v48  ;;  %v1421_v48 = vpack.c.bf16 %v876_v46, %v875_v60 }
 0x385   :  { %1390 = vmatprep.subr.bf16.mxu1 %v1389_v18  ;;  %v859_v18 = vld [vmem:[#allocation11 + $0x70] sm:$0xff] }
 0x386   :  { %v1423_v24 = vpack.c.bf16 %v860_v19, %v859_v18 }
 0x388   :  { %1392 = vmatpush1.bf16.msra.mxu1 %v1391_v25 }
 0x41e   :  { %v675_v33 = vpop.f32.mrb[2].mxu1 }
 0x41f   :  { %v1863_v22 = vsub.f32 %v1858_v7, %v675_v33  ;;  %v677_v23 = vpop.f32.mrb[3].mxu1  ;;  %v871_v33 = vld [vmem:[#allocation11 + $0xd0] sm:$0xff] }
 0x420   :  { %v1866_v26 = vsub.f32 %v1855_v6, %v677_v23  ;;  %v872_v23 = vld [vmem:[#allocation11 + $0xd8] sm:$0xff] }
 0x421   :  { %v682_v28 = vmul.f32 %v1863_v22, %v1863_v22 }
 0x422   :  { %v683_v27 = vmul.f32 %v1866_v26, %v1866_v26 }
 0x424   :  { %748 = vmatprep.mubr.f32.mxu0 %v683_v27  ;;  %v1411_v27 = vpack.c.bf16 %v854_v21, %v853_v41 }
 0x425   :  { %749 = vmatmul.mubr.f32.vlgmr.msra.gmra.mrb[4].mxu0 %v682_v28  ;;  %v1413_v28 = vpack.c.bf16 %v872_v23, %v871_v33 }
 0x426   :  { %1396 = vmatpush3.bf16.msra.mxu0 %v1395_v59 }
 0x427   :  { %1398 = vmatprep.subr.bf16.mxu0 %v1397_v62 }
 0x42a   :  { %1400 = vmatpush3.bf16.msra.mxu0 %v1399_v3 }
 0x42b   :  { %1402 = vmatprep.subr.bf16.mxu0 %v1401_v4 }
 0x42e   :  { %1404 = vmatpush3.bf16.msra.mxu0 %v1403_v11 }
 0x42f   :  { %1406 = vmatprep.subr.bf16.mxu0 %v1405_v12 }
 0x432   :  { %1408 = vmatpush3.bf16.msra.mxu0 %v1407_v17 }
 0x433   :  { %1410 = vmatprep.subr.bf16.mxu0 %v1409_v20 }
 0x436   :  { %1412 = vmatpush3.bf16.msra.mxu0 %v1411_v27 }
 0x437   :  { %1414 = vmatprep.subr.bf16.mxu0 %v1413_v28 }
 0x43a   :  { %1416 = vmatpush3.bf16.msra.mxu0 %v1415_v34 }
 0x43b   :  { %1418 = vmatprep.subr.bf16.mxu0 %v1417_v54 }
 0x43e   :  { %1420 = vmatpush3.bf16.msra.mxu0 %v1419_v57 }
 0x43f   :  { %1422 = vmatprep.subr.bf16.mxu0 %v1421_v48 }
 0x442   :  { %1424 = vmatpush3.bf16.msra.mxu0 %v1423_v24 }
 0x4f8   :  { %v750_v35 = vpop.f32.mrb[4].mxu0 }
 0x4f9   :  { %v751_v36 = vadd.f32 1e-05, %v750_v35  ;;  %v752_v39 = vpop.f32.mrb[5].mxu0 }
 0x4fa   :  { %v753_v40 = vadd.f32 1e-05, %v752_v39 }
 0x4fb   :  { %1440 = vrsqrt.f32 %v751_v36 }
 0x4fc   :  { %1442 = vrsqrt.f32 %v753_v40 }
 0x505   :  { %v1441_v42 = vpop.eup %1440 }
 0x506   :  { %v1443_v43 = vpop.eup %1442  ;;  %v757_v49 = vmul.f32 %v1441_v42, %v1863_v22  ;;  %v608_v22 = vld [vmem:[%s1904_s6] sm:$0x3] }
 0x507   :  { %v758_v47 = vmul.f32 %v1443_v43, %v1866_v26  ;;  %v763_v26 = vrot.slane %v608_v22, %v397_v58  ;;  %v767_v25 = vrot.slane %v608_v22, %v401_v61  ;;  %v973_v58 = vld [vmem:[%s1906_s8] ss:$0 sm:$0xff] }
 0x509   :  { %834 = vmatprep.mubr.f32.mxu1 %v758_v47 }
 0x50a   :  { %835 = vmatmul.mubr.f32.vlgmr.msra.gmra.mrb[4].mxu1 %v757_v49 }
 0x5dd   :  { %v836_v30 = vpop.f32.mrb[4].mxu1 }
 0x5de   :  { %v837_v31 = vadd.f32 %v836_v30, %v763_v26  ;;  %v838_v37 = vpop.f32.mrb[5].mxu1 }
 0x5df   :  { %v839_v38 = vadd.f32 %v838_v37, %v767_v25 }
 0x5e0   :  { %v841_v44 = vmax.f32 %v837_v31, 0.0 }
 0x5e1   :  { %v842_v45 = vmax.f32 %v839_v38, 0.0 }
 0x5e2   :  { %v843_v59 = vadd.f32 %v841_v44, %v1858_v7 }
 0x5e3   :  { %v844_v52 = vadd.f32 %v842_v45, %v1855_v6 }
 0x5e5   :  { %948 = vmatprep.mubr.f32.mxu0 %v844_v52 }
 0x5e6   :  { %949 = vmatmul.mubr.f32.vlgmr.msra.gmra.mrb[6].mxu0 %v843_v59 }
 0x6b9   :  { %v1006_v62 = vpop.f32.mrb[6].mxu0 }
 0x6ba   :  { %v1007_v63 = vpop.f32.mrb[7].mxu0 }
 0x6bb   :  { %v1008_v53 = vadd.f32 %v1007_v63, %v1006_v62 }
 0x6bd   :  { %v951_v61 = vadd.f32 %v1008_v53, %v973_v58 }
 0x6bf   :  { %954 = vst [vmem:[#allocation13] sm:$0xff] %v951_v61 }
 0x6c0   :  { %1587 = shalt.err (!%p1584_p10)
}
 0x6c1   :  { %s1588_s4 = scalar_lea.hbm %s1907_s9, 128 }
 0x6c2   :  { %p1589_p11 = scmp.ne.s32.totalorder %s1907_s9, %s1588_s4  ;;  %p1592_p12 = scmp.lt.u32.totalorder %s1588_s4, %s1907_s9 }
 0x6c4   :  { %p1594_p13 = pnand %p1592_p12, %p1589_p11 }
 0x6c6   :  { %1597 = shalt.err (!%p1594_p13)
}
 0x6c7   :  { %964 = dma.vmem_to_hbm [thread:$0]  %s962_s21, 128, %s1907_s9, [#allocation4]  }
 0x6c8   :  { %1606 = dma.done.wait [#allocation4], 128  }
 0x6c9   :  { %1607 = vsyncadd [#allocation4], 4294967168 }
 0x6ca   :  { %968 = vsyncpa [#allocation3], 1 }
 0x6cb   :  { %969 = vsyncpa [#allocation6], 1 }
 0x6cc   :  { %970 = vsyncpa [#allocation9], 1 }
 0x6cd   :  { %971 = vsyncpa [#allocation12], 1 }
 0x6ce   :  { %972 = vsyncpa [#allocation4], 1 }

</bundles_post_ra>
